<compile_context>
chip_gen: v7x
topology: tpu7x:2x2x1
jax: 0.10.0
libtpu: 0.0.40
codegen_flags: <defaults>
</compile_context>

<pallas_src>
import functools

import jax
import jax.numpy as jnp
from jax.experimental import pallas as pl
from jax.experimental.pallas import tpu as pltpu


CANONICAL_ETYPES = (
    ("event", "event2entity", "entity"),
    ("entity", "entity2event", "event"),
    ("entity", "entity2entity", "entity"),
    ("event", "event2event", "event"),
)
NTYPES = ("event", "entity")
ETYPE_SRC = {e: s for (s, e, _) in CANONICAL_ETYPES}
ETYPE_DST = {e: d for (_, e, d) in CANONICAL_ETYPES}
METAPATH_DICT = {
    "event2entity": ("event2entity", "entity2event"),
    "entity2entity": ("entity2entity",),
    "event2event": ("event2event",),
    "all": ("event2entity", "entity2event", "entity2entity", "event2event"),
}
NEG_SLOPE = 0.01


def _vmem():
    return pl.BlockSpec(memory_space=pltpu.MemorySpace.VMEM)


# ---------------------------------------------------------------------------
# Single fused kernel: layer-1 (packed), layer-2 (lifted), 'cat' pooling, SEM.
# ---------------------------------------------------------------------------
def _fused_forward_kernel(
    # node features
    x_ev_ref, x_en_ref,
    # row-normalized adjacencies (dst x src), one per canonical etype
    a_ev2en_ref, a_en2ev_ref, a_en2en_ref, a_ev2ev_ref,
    # packed layer-1 params: (2, nfeat, 2*hid) / (2, 1, 2*hid), indexed by src ntype
    w1_ref, b1_ref,
    # lifted layer-2 params: (C, 2*hid, n_views*hid) / (C, 1, n_views*hid)
    w2_ref, b2_ref,
    # SEM decoder params
    sw1_ref, sb1_ref, sw2_ref, sb2_ref,
    # outputs
    emb_ev_ref, emb_en_ref, sem_ref,
    *, plan, hid, n_views, compute_sem):
    f32 = jnp.float32

    x = {"event": x_ev_ref[...], "entity": x_en_ref[...]}
    adj = {
        "event2entity": a_ev2en_ref[...],
        "entity2event": a_en2ev_ref[...],
        "entity2entity": a_en2en_ref[...],
        "event2event": a_ev2ev_ref[...],
    }

    # ---- layer 1: one packed projection per src ntype (lane-dense 2*hid-wide
    #      output; columns = per-etype blocks) -------------------------------
    proj = {}
    for i, nt in enumerate(NTYPES):
        proj[nt] = jnp.dot(x[nt], w1_ref[i], preferred_element_type=f32) + b1_ref[i]

    # ---- layer-1 aggregation: one mean-aggregated + leaky_relu "carrier" per
    #      (view, dst ntype).  Only the producing etype's hid-block is
    #      meaningful; the other block is annihilated by the zero rows of the
    #      lifted layer-2 weights, so no lane slicing is ever required. -------
    carrier = {}
    for key, adj_name, src_nt in plan["carriers"]:
        m = jnp.dot(adj[adj_name], proj[src_nt], preferred_element_type=f32)
        carrier[key] = jnp.where(m >= 0, m, NEG_SLOPE * m)

    # ---- layer 2 + pooling='cat': each contribution lands directly in its
    #      view's column block of the (N, n_views*hid) embedding slab ---------
    emb = {nt: jnp.zeros((x[nt].shape[0], n_views * hid), f32) for nt in NTYPES}
    for c_idx, adj_name, carrier_key, src_nt, dst_nt in plan["contribs"]:
        h1 = carrier.get(carrier_key)
        if h1 is None:  # src ntype received no layer-1 messages in this view
            h1 = jnp.zeros((x[src_nt].shape[0], 2 * hid), f32)
        t = jnp.dot(h1, w2_ref[c_idx], preferred_element_type=f32) + b2_ref[c_idx]
        emb[dst_nt] = emb[dst_nt] + jnp.dot(adj[adj_name], t,
                                            preferred_element_type=f32)

    emb_ev_ref[...] = emb["event"]
    emb_en_ref[...] = emb["entity"]

    # ---- SEM reconstruction loss: mean over ntypes of per-ntype MSE ---------
    if compute_sem:
        acc = jnp.zeros((1, 1), f32)
        for nt in NTYPES:
            h = jnp.dot(emb[nt], sw1_ref[...], preferred_element_type=f32) + sb1_ref[...]
            h = jnp.maximum(h, 0.0)
            x_hat = jnp.dot(h, sw2_ref[...], preferred_element_type=f32) + sb2_ref[...]
            d = x_hat - x[nt]
            sq = d * d
            row = jnp.mean(sq, axis=1, keepdims=True)            # (N, 1)
            acc = acc + jnp.mean(row, axis=0, keepdims=True)     # (1, 1)
        sem_ref[...] = acc * (1.0 / len(NTYPES))
    else:
        sem_ref[...] = jnp.zeros((1, 1), f32)


def _forward_impl(x_event, x_entity, adjs, params, *, plan, hid, n_views,
                  compute_sem):
    emb_dim = n_views * hid
    kernel = functools.partial(
        _fused_forward_kernel, plan=plan, hid=hid, n_views=n_views,
        compute_sem=compute_sem)
    emb_ev, emb_en, sem = pl.pallas_call(
        kernel,
        out_shape=(
            jax.ShapeDtypeStruct((x_event.shape[0], emb_dim), jnp.float32),
            jax.ShapeDtypeStruct((x_entity.shape[0], emb_dim), jnp.float32),
            jax.ShapeDtypeStruct((1, 1), jnp.float32),
        ),
        in_specs=[_vmem() for _ in range(14)],
        out_specs=(_vmem(), _vmem(), _vmem()),
    )(x_event, x_entity,
      adjs["event2entity"], adjs["entity2event"],
      adjs["entity2entity"], adjs["event2event"],
      params["w1"], params["b1"], params["w2l"], params["b2l"],
      params["sw1"], params["sb1"], params["sw2"], params["sb2"])
    return emb_ev, emb_en, sem[0, 0]


# ---------------------------------------------------------------------------
# Parameter construction / packing and the model wrapper
# ---------------------------------------------------------------------------
def _linear_init(key, fan_in, fan_out):
    kw, kb = jax.random.split(key)
    bound = 1.0 / float(fan_in) ** 0.5
    w = jax.random.uniform(kw, (fan_in, fan_out), jnp.float32, -bound, bound)
    b = jax.random.uniform(kb, (fan_out,), jnp.float32, -bound, bound)
    return w, b


class HeteroEventNetPallas:
    """pooling='cat', model_base='SEM_ARC', eval mode (dropout disabled)."""

    def __init__(self, key, nfeat=128, nemb=96,
                 views="event2entity entity2entity event2event",
                 pooling="cat", model_base="SEM_ARC"):
        assert pooling == "cat"
        self.nfeat, self.nemb = nfeat, nemb
        self.views = views.split()
        self.if_SEM = "SEM" in model_base
        self.if_DGI = "DGI" in model_base
        self.if_SKG = "SKG" in model_base
        self.if_ARC = "ARC" in model_base

        hid = nemb // 3          # HeteroRGCN(in=nfeat, hidden=nemb//3, out=nemb//3)
        n_views = len(self.views)
        emb_dim = hid * n_views
        self.hid, self.n_views, self.emb_dim = hid, n_views, emb_dim

        # ---- raw per-etype parameters (also kept for the pure-JAX reference) --
        etypes = [e for (_, e, _) in CANONICAL_ETYPES]
        keys = jax.random.split(key, 2 * len(etypes) + 2)
        self.raw_layer1 = {e: _linear_init(keys[i], nfeat, hid)
                           for i, e in enumerate(etypes)}
        self.raw_layer2 = {e: _linear_init(keys[len(etypes) + i], hid, hid)
                           for i, e in enumerate(etypes)}
        sem_w1, sem_b1 = _linear_init(keys[-2], emb_dim, nemb)
        sem_w2, sem_b2 = _linear_init(keys[-1], nemb, nfeat)
        self.raw_sem = (sem_w1, sem_b1, sem_w2, sem_b2)

        # ---- pack layer-1 weights per src ntype (lane-dense 2*hid matmuls) ----
        src_etypes = {nt: [e for (s, e, _) in CANONICAL_ETYPES if s == nt]
                      for nt in NTYPES}
        col_block = {}
        for nt in NTYPES:
            assert len(src_etypes[nt]) == 2
            for j, e in enumerate(src_etypes[nt]):
                col_block[e] = j
        w1_packed = jnp.stack(
            [jnp.concatenate([self.raw_layer1[e][0] for e in src_etypes[nt]], axis=1)
             for nt in NTYPES])                                    # (2, nfeat, 2*hid)
        b1_packed = jnp.stack(
            [jnp.concatenate([self.raw_layer1[e][1] for e in src_etypes[nt]])[None, :]
             for nt in NTYPES])                                    # (2, 1, 2*hid)

        # ---- static execution plan + zero-lifted layer-2 weights --------------
        carriers, producer = [], {}
        for vi, view in enumerate(self.views):
            ets = METAPATH_DICT[view]
            for nt in NTYPES:
                incoming = [e for e in ets if ETYPE_DST[e] == nt]
                # TODO(synk): the fused kernel handles <=1 incoming etype per
                # (view, ntype); the 'all' view (cross-etype sum per dst) would
                # need an in-kernel slice+sum and is not wired in.
                assert len(incoming) <= 1, "multi-etype-per-dst views unsupported"
                if incoming:
                    e = incoming[0]
                    carriers.append(((vi, nt), e, ETYPE_SRC[e]))
                    producer[(vi, nt)] = e

        contribs, w2_lifted, b2_lifted = [], [], []
        pw = 2 * hid
        for vi, view in enumerate(self.views):
            for e in METAPATH_DICT[view]:
                s, d = ETYPE_SRC[e], ETYPE_DST[e]
                w2, b2 = self.raw_layer2[e]
                prod = producer.get((vi, s))
                row0 = (col_block[prod] * hid) if prod is not None else 0
                wl = jnp.zeros((pw, emb_dim), jnp.float32)
                wl = wl.at[row0:row0 + hid, vi * hid:(vi + 1) * hid].set(w2)
                bl = jnp.zeros((1, emb_dim), jnp.float32)
                bl = bl.at[:, vi * hid:(vi + 1) * hid].set(b2[None, :])
                contribs.append((len(w2_lifted), e, (vi, s), s, d))
                w2_lifted.append(wl)
                b2_lifted.append(bl)

        self.plan = {"carriers": tuple(carriers), "contribs": tuple(contribs)}
        self.params = {
            "w1": w1_packed, "b1": b1_packed,
            "w2l": jnp.stack(w2_lifted),                           # (C, 2*hid, emb_dim)
            "b2l": jnp.stack(b2_lifted),                           # (C, 1, emb_dim)
            "sw1": sem_w1, "sb1": sem_b1[None, :],
            "sw2": sem_w2, "sb2": sem_b2[None, :],
        }

        # one jitted, fully fused forward (pure function; no self mutation)
        self._fwd = jax.jit(functools.partial(
            _forward_impl, plan=self.plan, hid=hid, n_views=n_views,
            compute_sem=self.if_SEM))

    def _run(self, x_dict, adjs):
        emb_ev, emb_en, sem = self._fwd(x_dict["event"], x_dict["entity"],
                                        adjs, self.params)
        return {"event": emb_ev, "entity": emb_en}, sem

    def encode(self, x_dict, adjs):
        return self._run(x_dict, adjs)[0]

    def forward(self, x_dict, adjs):
        _, sem = self._run(x_dict, adjs)
        zero = jnp.float32(0.0)
        # TODO(synk): DGI / SKG / ARC trainers are external graph-sampling modules
        # (DGI_trainer / SKG_trainer / ARC_trainer) with no definition available;
        # their losses default to 0, matching the disabled-branch behaviour.
        return sem, zero, zero, zero


# ---------------------------------------------------------------------------
# Pure-JAX reference (unpacked per-etype math) for a silent sanity check
# ---------------------------------------------------------------------------
def _reference_forward(model, x_dict, adjs):
    P = jax.lax.Precision.HIGHEST
    hid = model.hid

    def message(a, x, w, b):
        return jnp.dot(a, jnp.dot(x, w, precision=P) + b, precision=P)

    emb = {nt: [] for nt in NTYPES}
    for view in model.views:
        ets = METAPATH_DICT[view]
        h1 = {}
        for nt in NTYPES:
            terms = [message(adjs[e], x_dict[ETYPE_SRC[e]], *model.raw_layer1[e])
                     for e in ets if ETYPE_DST[e] == nt]
            if terms:
                s = sum(terms)
                h1[nt] = jnp.where(s >= 0, s, NEG_SLOPE * s)
            else:
                h1[nt] = jnp.zeros((x_dict[nt].shape[0], hid), jnp.float32)
        for nt in NTYPES:
            terms = [message(adjs[e], h1[ETYPE_SRC[e]], *model.raw_layer2[e])
                     for e in ets if ETYPE_DST[e] == nt]
            emb[nt].append(sum(terms) if terms
                           else jnp.zeros((x_dict[nt].shape[0], hid), jnp.float32))
    emb = {nt: jnp.concatenate(v, axis=1) for nt, v in emb.items()}

    sw1, sb1, sw2, sb2 = model.raw_sem
    losses = []
    for nt in NTYPES:
        h = jnp.maximum(jnp.dot(emb[nt], sw1, precision=P) + sb1, 0.0)
        x_hat = jnp.dot(h, sw2, precision=P) + sb2
        losses.append(jnp.mean((x_hat - x_dict[nt]) ** 2))
    return emb, jnp.mean(jnp.stack(losses))


def _row_normalize(a):
    # NOTE: exact 'mean' aggregation for binary adjacencies (deg is a count).
    deg = jnp.sum(a, axis=1, keepdims=True)
    return jnp.where(deg > 0, a / jnp.maximum(deg, 1.0), 0.0)


if __name__ == "__main__":
    key = jax.random.PRNGKey(0)
    k_feat_ev, k_feat_en, k_adj1, k_adj2, k_adj3, k_param = jax.random.split(key, 6)

    N_EVENT, N_ENTITY, NFEAT, NEMB = 16, 32, 128, 96

    x_dict = {
        "event": jax.random.normal(k_feat_ev, (N_EVENT, NFEAT), jnp.float32),
        "entity": jax.random.normal(k_feat_en, (N_ENTITY, NFEAT), jnp.float32),
    }

    a_ev2en = (jax.random.uniform(k_adj1, (N_ENTITY, N_EVENT)) < 0.3).astype(jnp.float32)
    a_en2en = (jax.random.uniform(k_adj2, (N_ENTITY, N_ENTITY)) < 0.3).astype(jnp.float32)
    a_ev2ev = (jax.random.uniform(k_adj3, (N_EVENT, N_EVENT)) < 0.3).astype(jnp.float32)
    adjs = {
        "event2entity": _row_normalize(a_ev2en),       # (dst=entity, src=event)
        "entity2event": _row_normalize(a_ev2en.T),     # reverse edges
        "entity2entity": _row_normalize(a_en2en),
        "event2event": _row_normalize(a_ev2ev),
    }

    model = HeteroEventNetPallas(k_param, nfeat=NFEAT, nemb=NEMB)
    sem, dgi, skg, arc = model.forward(x_dict, adjs)
    emb = model.encode(x_dict, adjs)
    jax.block_until_ready((sem, dgi, skg, arc, emb))

    # silent sanity check against a pure-JAX reference (loose tolerance covers
    # MXU-vs-XLA f32 matmul precision differences)
    ref_emb, ref_sem = _reference_forward(model, x_dict, adjs)
    assert abs(float(sem) - float(ref_sem)) < 2e-2
    for nt in NTYPES:
        assert float(jnp.max(jnp.abs(emb[nt] - ref_emb[nt]))) < 2e-2

    print("KERNEL_OK")
</pallas_src>

<mosaic_0001>
module attributes {stable_mosaic.version = 11 : i64} {
  func.func @_fused_forward_kernel(%arg0: memref<16x128xf32, #tpu.memory_space<vmem>>, %arg1: memref<32x128xf32, #tpu.memory_space<vmem>>, %arg2: memref<32x16xf32, #tpu.memory_space<vmem>>, %arg3: memref<16x32xf32, #tpu.memory_space<vmem>>, %arg4: memref<32x32xf32, #tpu.memory_space<vmem>>, %arg5: memref<16x16xf32, #tpu.memory_space<vmem>>, %arg6: memref<2x128x64xf32, #tpu.memory_space<vmem>>, %arg7: memref<2x1x64xf32, #tpu.memory_space<vmem>>, %arg8: memref<4x64x96xf32, #tpu.memory_space<vmem>>, %arg9: memref<4x1x96xf32, #tpu.memory_space<vmem>>, %arg10: memref<96x96xf32, #tpu.memory_space<vmem>>, %arg11: memref<1x96xf32, #tpu.memory_space<vmem>>, %arg12: memref<96x128xf32, #tpu.memory_space<vmem>>, %arg13: memref<1x128xf32, #tpu.memory_space<vmem>>, %arg14: memref<16x96xf32, #tpu.memory_space<vmem>>, %arg15: memref<32x96xf32, #tpu.memory_space<vmem>>, %arg16: memref<1x1xf32, #tpu.memory_space<vmem>>) attributes {dimension_semantics = [], scalar_prefetch = 0 : i64, scratch_operands = 0 : i64, tpu.core_type = #tpu.core_type<tc>} {
    %c0 = arith.constant 0 : index
    %c0_0 = arith.constant 0 : index
    %0 = vector.load %arg0[%c0, %c0_0] : memref<16x128xf32, #tpu.memory_space<vmem>>, vector<16x128xf32>
    %c0_1 = arith.constant 0 : index
    %c0_2 = arith.constant 0 : index
    %1 = vector.load %arg1[%c0_1, %c0_2] : memref<32x128xf32, #tpu.memory_space<vmem>>, vector<32x128xf32>
    %c0_3 = arith.constant 0 : index
    %c0_4 = arith.constant 0 : index
    %2 = vector.load %arg2[%c0_3, %c0_4] : memref<32x16xf32, #tpu.memory_space<vmem>>, vector<32x16xf32>
    %c0_5 = arith.constant 0 : index
    %c0_6 = arith.constant 0 : index
    %3 = vector.load %arg3[%c0_5, %c0_6] : memref<16x32xf32, #tpu.memory_space<vmem>>, vector<16x32xf32>
    %c0_7 = arith.constant 0 : index
    %c0_8 = arith.constant 0 : index
    %4 = vector.load %arg4[%c0_7, %c0_8] : memref<32x32xf32, #tpu.memory_space<vmem>>, vector<32x32xf32>
    %c0_9 = arith.constant 0 : index
    %c0_10 = arith.constant 0 : index
    %5 = vector.load %arg5[%c0_9, %c0_10] : memref<16x16xf32, #tpu.memory_space<vmem>>, vector<16x16xf32>
    %c0_11 = arith.constant 0 : index
    %c0_12 = arith.constant 0 : index
    %c0_13 = arith.constant 0 : index
    %6 = vector.load %arg6[%c0_11, %c0_12, %c0_13] : memref<2x128x64xf32, #tpu.memory_space<vmem>>, vector<1x128x64xf32>
    %7 = vector.shape_cast %6 : vector<1x128x64xf32> to vector<128x64xf32>
    %cst = arith.constant dense<0.000000e+00> : vector<16x64xf32>
    %8 = tpu.matmul %0, %7, %cst {dimension_numbers = #tpu.dot_dimension_numbers<[1], [0], [0], [1], [0, 0, 1, 1], [], []>} : vector<16x128xf32>, vector<128x64xf32>, vector<16x64xf32> -> vector<16x64xf32>
    %c0_14 = arith.constant 0 : index
    %c0_15 = arith.constant 0 : index
    %c0_16 = arith.constant 0 : index
    %9 = vector.load %arg7[%c0_14, %c0_15, %c0_16] : memref<2x1x64xf32, #tpu.memory_space<vmem>>, vector<1x1x64xf32>
    %10 = vector.shape_cast %9 : vector<1x1x64xf32> to vector<1x64xf32>
    %11 = vector.broadcast %10 : vector<1x64xf32> to vector<16x64xf32>
    %12 = arith.addf %8, %11 : vector<16x64xf32>
    %c1 = arith.constant 1 : index
    %c0_17 = arith.constant 0 : index
    %c0_18 = arith.constant 0 : index
    %13 = vector.load %arg6[%c1, %c0_17, %c0_18] : memref<2x128x64xf32, #tpu.memory_space<vmem>>, vector<1x128x64xf32>
    %14 = vector.shape_cast %13 : vector<1x128x64xf32> to vector<128x64xf32>
    %cst_19 = arith.constant dense<0.000000e+00> : vector<32x64xf32>
    %15 = tpu.matmul %1, %14, %cst_19 {dimension_numbers = #tpu.dot_dimension_numbers<[1], [0], [0], [1], [0, 0, 1, 1], [], []>} : vector<32x128xf32>, vector<128x64xf32>, vector<32x64xf32> -> vector<32x64xf32>
    %c1_20 = arith.constant 1 : index
    %c0_21 = arith.constant 0 : index
    %c0_22 = arith.constant 0 : index
    %16 = vector.load %arg7[%c1_20, %c0_21, %c0_22] : memref<2x1x64xf32, #tpu.memory_space<vmem>>, vector<1x1x64xf32>
    %17 = vector.shape_cast %16 : vector<1x1x64xf32> to vector<1x64xf32>
    %18 = vector.broadcast %17 : vector<1x64xf32> to vector<32x64xf32>
    %19 = arith.addf %15, %18 : vector<32x64xf32>
    %cst_23 = arith.constant dense<0.000000e+00> : vector<16x64xf32>
    %20 = tpu.matmul %3, %19, %cst_23 {dimension_numbers = #tpu.dot_dimension_numbers<[1], [0], [0], [1], [0, 0, 1, 1], [], []>} : vector<16x32xf32>, vector<32x64xf32>, vector<16x64xf32> -> vector<16x64xf32>
    %cst_24 = arith.constant 0.000000e+00 : f32
    %21 = vector.broadcast %cst_24 : f32 to vector<16x64xf32>
    %22 = arith.cmpf oge, %20, %21 : vector<16x64xf32>
    %cst_25 = arith.constant 0.00999999977 : f32
    %23 = vector.broadcast %cst_25 : f32 to vector<16x64xf32>
    %24 = arith.mulf %23, %20 : vector<16x64xf32>
    %25 = arith.select %22, %20, %24 : vector<16x64xi1>, vector<16x64xf32>
    %cst_26 = arith.constant dense<0.000000e+00> : vector<32x64xf32>
    %26 = tpu.matmul %2, %12, %cst_26 {dimension_numbers = #tpu.dot_dimension_numbers<[1], [0], [0], [1], [0, 0, 1, 1], [], []>} : vector<32x16xf32>, vector<16x64xf32>, vector<32x64xf32> -> vector<32x64xf32>
    %cst_27 = arith.constant 0.000000e+00 : f32
    %27 = vector.broadcast %cst_27 : f32 to vector<32x64xf32>
    %28 = arith.cmpf oge, %26, %27 : vector<32x64xf32>
    %cst_28 = arith.constant 0.00999999977 : f32
    %29 = vector.broadcast %cst_28 : f32 to vector<32x64xf32>
    %30 = arith.mulf %29, %26 : vector<32x64xf32>
    %31 = arith.select %28, %26, %30 : vector<32x64xi1>, vector<32x64xf32>
    %cst_29 = arith.constant dense<0.000000e+00> : vector<32x64xf32>
    %32 = tpu.matmul %4, %19, %cst_29 {dimension_numbers = #tpu.dot_dimension_numbers<[1], [0], [0], [1], [0, 0, 1, 1], [], []>} : vector<32x32xf32>, vector<32x64xf32>, vector<32x64xf32> -> vector<32x64xf32>
    %cst_30 = arith.constant 0.000000e+00 : f32
    %33 = vector.broadcast %cst_30 : f32 to vector<32x64xf32>
    %34 = arith.cmpf oge, %32, %33 : vector<32x64xf32>
    %cst_31 = arith.constant 0.00999999977 : f32
    %35 = vector.broadcast %cst_31 : f32 to vector<32x64xf32>
    %36 = arith.mulf %35, %32 : vector<32x64xf32>
    %37 = arith.select %34, %32, %36 : vector<32x64xi1>, vector<32x64xf32>
    %cst_32 = arith.constant dense<0.000000e+00> : vector<16x64xf32>
    %38 = tpu.matmul %5, %12, %cst_32 {dimension_numbers = #tpu.dot_dimension_numbers<[1], [0], [0], [1], [0, 0, 1, 1], [], []>} : vector<16x16xf32>, vector<16x64xf32>, vector<16x64xf32> -> vector<16x64xf32>
    %cst_33 = arith.constant 0.000000e+00 : f32
    %39 = vector.broadcast %cst_33 : f32 to vector<16x64xf32>
    %40 = arith.cmpf oge, %38, %39 : vector<16x64xf32>
    %cst_34 = arith.constant 0.00999999977 : f32
    %41 = vector.broadcast %cst_34 : f32 to vector<16x64xf32>
    %42 = arith.mulf %41, %38 : vector<16x64xf32>
    %43 = arith.select %40, %38, %42 : vector<16x64xi1>, vector<16x64xf32>
    %cst_35 = arith.constant 0.000000e+00 : f32
    %44 = vector.broadcast %cst_35 : f32 to vector<16x96xf32>
    %cst_36 = arith.constant 0.000000e+00 : f32
    %45 = vector.broadcast %cst_36 : f32 to vector<32x96xf32>
    %c0_37 = arith.constant 0 : index
    %c0_38 = arith.constant 0 : index
    %c0_39 = arith.constant 0 : index
    %46 = vector.load %arg8[%c0_37, %c0_38, %c0_39] : memref<4x64x96xf32, #tpu.memory_space<vmem>>, vector<1x64x96xf32>
    %47 = vector.shape_cast %46 : vector<1x64x96xf32> to vector<64x96xf32>
    %cst_40 = arith.constant dense<0.000000e+00> : vector<16x96xf32>
    %48 = tpu.matmul %25, %47, %cst_40 {dimension_numbers = #tpu.dot_dimension_numbers<[1], [0], [0], [1], [0, 0, 1, 1], [], []>} : vector<16x64xf32>, vector<64x96xf32>, vector<16x96xf32> -> vector<16x96xf32>
    %c0_41 = arith.constant 0 : index
    %c0_42 = arith.constant 0 : index
    %c0_43 = arith.constant 0 : index
    %49 = vector.load %arg9[%c0_41, %c0_42, %c0_43] : memref<4x1x96xf32, #tpu.memory_space<vmem>>, vector<1x1x96xf32>
    %50 = vector.shape_cast %49 : vector<1x1x96xf32> to vector<1x96xf32>
    %51 = vector.broadcast %50 : vector<1x96xf32> to vector<16x96xf32>
    %52 = arith.addf %48, %51 : vector<16x96xf32>
    %cst_44 = arith.constant dense<0.000000e+00> : vector<32x96xf32>
    %53 = tpu.matmul %2, %52, %cst_44 {dimension_numbers = #tpu.dot_dimension_numbers<[1], [0], [0], [1], [0, 0, 1, 1], [], []>} : vector<32x16xf32>, vector<16x96xf32>, vector<32x96xf32> -> vector<32x96xf32>
    %54 = arith.addf %45, %53 : vector<32x96xf32>
    %c1_45 = arith.constant 1 : index
    %c0_46 = arith.constant 0 : index
    %c0_47 = arith.constant 0 : index
    %55 = vector.load %arg8[%c1_45, %c0_46, %c0_47] : memref<4x64x96xf32, #tpu.memory_space<vmem>>, vector<1x64x96xf32>
    %56 = vector.shape_cast %55 : vector<1x64x96xf32> to vector<64x96xf32>
    %cst_48 = arith.constant dense<0.000000e+00> : vector<32x96xf32>
    %57 = tpu.matmul %31, %56, %cst_48 {dimension_numbers = #tpu.dot_dimension_numbers<[1], [0], [0], [1], [0, 0, 1, 1], [], []>} : vector<32x64xf32>, vector<64x96xf32>, vector<32x96xf32> -> vector<32x96xf32>
    %c1_49 = arith.constant 1 : index
    %c0_50 = arith.constant 0 : index
    %c0_51 = arith.constant 0 : index
    %58 = vector.load %arg9[%c1_49, %c0_50, %c0_51] : memref<4x1x96xf32, #tpu.memory_space<vmem>>, vector<1x1x96xf32>
    %59 = vector.shape_cast %58 : vector<1x1x96xf32> to vector<1x96xf32>
    %60 = vector.broadcast %59 : vector<1x96xf32> to vector<32x96xf32>
    %61 = arith.addf %57, %60 : vector<32x96xf32>
    %cst_52 = arith.constant dense<0.000000e+00> : vector<16x96xf32>
    %62 = tpu.matmul %3, %61, %cst_52 {dimension_numbers = #tpu.dot_dimension_numbers<[1], [0], [0], [1], [0, 0, 1, 1], [], []>} : vector<16x32xf32>, vector<32x96xf32>, vector<16x96xf32> -> vector<16x96xf32>
    %63 = arith.addf %44, %62 : vector<16x96xf32>
    %c2 = arith.constant 2 : index
    %c0_53 = arith.constant 0 : index
    %c0_54 = arith.constant 0 : index
    %64 = vector.load %arg8[%c2, %c0_53, %c0_54] : memref<4x64x96xf32, #tpu.memory_space<vmem>>, vector<1x64x96xf32>
    %65 = vector.shape_cast %64 : vector<1x64x96xf32> to vector<64x96xf32>
    %cst_55 = arith.constant dense<0.000000e+00> : vector<32x96xf32>
    %66 = tpu.matmul %37, %65, %cst_55 {dimension_numbers = #tpu.dot_dimension_numbers<[1], [0], [0], [1], [0, 0, 1, 1], [], []>} : vector<32x64xf32>, vector<64x96xf32>, vector<32x96xf32> -> vector<32x96xf32>
    %c2_56 = arith.constant 2 : index
    %c0_57 = arith.constant 0 : index
    %c0_58 = arith.constant 0 : index
    %67 = vector.load %arg9[%c2_56, %c0_57, %c0_58] : memref<4x1x96xf32, #tpu.memory_space<vmem>>, vector<1x1x96xf32>
    %68 = vector.shape_cast %67 : vector<1x1x96xf32> to vector<1x96xf32>
    %69 = vector.broadcast %68 : vector<1x96xf32> to vector<32x96xf32>
    %70 = arith.addf %66, %69 : vector<32x96xf32>
    %cst_59 = arith.constant dense<0.000000e+00> : vector<32x96xf32>
    %71 = tpu.matmul %4, %70, %cst_59 {dimension_numbers = #tpu.dot_dimension_numbers<[1], [0], [0], [1], [0, 0, 1, 1], [], []>} : vector<32x32xf32>, vector<32x96xf32>, vector<32x96xf32> -> vector<32x96xf32>
    %72 = arith.addf %54, %71 : vector<32x96xf32>
    %c3 = arith.constant 3 : index
    %c0_60 = arith.constant 0 : index
    %c0_61 = arith.constant 0 : index
    %73 = vector.load %arg8[%c3, %c0_60, %c0_61] : memref<4x64x96xf32, #tpu.memory_space<vmem>>, vector<1x64x96xf32>
    %74 = vector.shape_cast %73 : vector<1x64x96xf32> to vector<64x96xf32>
    %cst_62 = arith.constant dense<0.000000e+00> : vector<16x96xf32>
    %75 = tpu.matmul %43, %74, %cst_62 {dimension_numbers = #tpu.dot_dimension_numbers<[1], [0], [0], [1], [0, 0, 1, 1], [], []>} : vector<16x64xf32>, vector<64x96xf32>, vector<16x96xf32> -> vector<16x96xf32>
    %c3_63 = arith.constant 3 : index
    %c0_64 = arith.constant 0 : index
    %c0_65 = arith.constant 0 : index
    %76 = vector.load %arg9[%c3_63, %c0_64, %c0_65] : memref<4x1x96xf32, #tpu.memory_space<vmem>>, vector<1x1x96xf32>
    %77 = vector.shape_cast %76 : vector<1x1x96xf32> to vector<1x96xf32>
    %78 = vector.broadcast %77 : vector<1x96xf32> to vector<16x96xf32>
    %79 = arith.addf %75, %78 : vector<16x96xf32>
    %cst_66 = arith.constant dense<0.000000e+00> : vector<16x96xf32>
    %80 = tpu.matmul %5, %79, %cst_66 {dimension_numbers = #tpu.dot_dimension_numbers<[1], [0], [0], [1], [0, 0, 1, 1], [], []>} : vector<16x16xf32>, vector<16x96xf32>, vector<16x96xf32> -> vector<16x96xf32>
    %81 = arith.addf %63, %80 : vector<16x96xf32>
    %c0_67 = arith.constant 0 : index
    %c0_68 = arith.constant 0 : index
    %82 = vector.load %arg14[%c0_67, %c0_68] : memref<16x96xf32, #tpu.memory_space<vmem>>, vector<16x96xf32>
    tpu.vector_store %arg14[%c0_67, %c0_68], %81 {strides = array<i32>} : memref<16x96xf32, #tpu.memory_space<vmem>>, vector<16x96xf32>,
    %c0_69 = arith.constant 0 : index
    %c0_70 = arith.constant 0 : index
    %83 = vector.load %arg15[%c0_69, %c0_70] : memref<32x96xf32, #tpu.memory_space<vmem>>, vector<32x96xf32>
    tpu.vector_store %arg15[%c0_69, %c0_70], %72 {strides = array<i32>} : memref<32x96xf32, #tpu.memory_space<vmem>>, vector<32x96xf32>,
    %cst_71 = arith.constant 0.000000e+00 : f32
    %84 = vector.broadcast %cst_71 : f32 to vector<1x1xf32>
    %c0_72 = arith.constant 0 : index
    %c0_73 = arith.constant 0 : index
    %85 = vector.load %arg10[%c0_72, %c0_73] : memref<96x96xf32, #tpu.memory_space<vmem>>, vector<96x96xf32>
    %cst_74 = arith.constant dense<0.000000e+00> : vector<16x96xf32>
    %86 = tpu.matmul %81, %85, %cst_74 {dimension_numbers = #tpu.dot_dimension_numbers<[1], [0], [0], [1], [0, 0, 1, 1], [], []>} : vector<16x96xf32>, vector<96x96xf32>, vector<16x96xf32> -> vector<16x96xf32>
    %c0_75 = arith.constant 0 : index
    %c0_76 = arith.constant 0 : index
    %87 = vector.load %arg11[%c0_75, %c0_76] : memref<1x96xf32, #tpu.memory_space<vmem>>, vector<1x96xf32>
    %88 = vector.broadcast %87 : vector<1x96xf32> to vector<16x96xf32>
    %89 = arith.addf %86, %88 : vector<16x96xf32>
    %cst_77 = arith.constant 0.000000e+00 : f32
    %90 = vector.broadcast %cst_77 : f32 to vector<16x96xf32>
    %91 = arith.maximumf %89, %90 : vector<16x96xf32>
    %c0_78 = arith.constant 0 : index
    %c0_79 = arith.constant 0 : index
    %92 = vector.load %arg12[%c0_78, %c0_79] : memref<96x128xf32, #tpu.memory_space<vmem>>, vector<96x128xf32>
    %cst_80 = arith.constant dense<0.000000e+00> : vector<16x128xf32>
    %93 = tpu.matmul %91, %92, %cst_80 {dimension_numbers = #tpu.dot_dimension_numbers<[1], [0], [0], [1], [0, 0, 1, 1], [], []>} : vector<16x96xf32>, vector<96x128xf32>, vector<16x128xf32> -> vector<16x128xf32>
    %c0_81 = arith.constant 0 : index
    %c0_82 = arith.constant 0 : index
    %94 = vector.load %arg13[%c0_81, %c0_82] : memref<1x128xf32, #tpu.memory_space<vmem>>, vector<1x128xf32>
    %95 = vector.broadcast %94 : vector<1x128xf32> to vector<16x128xf32>
    %96 = arith.addf %93, %95 : vector<16x128xf32>
    %97 = arith.subf %96, %0 : vector<16x128xf32>
    %98 = arith.mulf %97, %97 : vector<16x128xf32>
    %cst_83 = arith.constant dense<0.000000e+00> : vector<16xf32>
    %99 = vector.multi_reduction <add>, %98, %cst_83 [1] : vector<16x128xf32> to vector<16xf32>
    %100 = vector.shape_cast %99 : vector<16xf32> to vector<16x1xf32>
    %cst_84 = arith.constant 1.280000e+02 : f32
    %101 = vector.broadcast %cst_84 : f32 to vector<16x1xf32>
    %102 = arith.divf %100, %101 : vector<16x1xf32>
    %cst_85 = arith.constant dense<0.000000e+00> : vector<1xf32>
    %103 = vector.multi_reduction <add>, %102, %cst_85 [0] : vector<16x1xf32> to vector<1xf32>
    %104 = vector.shape_cast %103 : vector<1xf32> to vector<1x1xf32>
    %cst_86 = arith.constant 1.600000e+01 : f32
    %105 = vector.broadcast %cst_86 : f32 to vector<1x1xf32>
    %106 = arith.divf %104, %105 : vector<1x1xf32>
    %107 = arith.addf %84, %106 : vector<1x1xf32>
    %c0_87 = arith.constant 0 : index
    %c0_88 = arith.constant 0 : index
    %108 = vector.load %arg10[%c0_87, %c0_88] : memref<96x96xf32, #tpu.memory_space<vmem>>, vector<96x96xf32>
    %cst_89 = arith.constant dense<0.000000e+00> : vector<32x96xf32>
    %109 = tpu.matmul %72, %108, %cst_89 {dimension_numbers = #tpu.dot_dimension_numbers<[1], [0], [0], [1], [0, 0, 1, 1], [], []>} : vector<32x96xf32>, vector<96x96xf32>, vector<32x96xf32> -> vector<32x96xf32>
    %c0_90 = arith.constant 0 : index
    %c0_91 = arith.constant 0 : index
    %110 = vector.load %arg11[%c0_90, %c0_91] : memref<1x96xf32, #tpu.memory_space<vmem>>, vector<1x96xf32>
    %111 = vector.broadcast %110 : vector<1x96xf32> to vector<32x96xf32>
    %112 = arith.addf %109, %111 : vector<32x96xf32>
    %cst_92 = arith.constant 0.000000e+00 : f32
    %113 = vector.broadcast %cst_92 : f32 to vector<32x96xf32>
    %114 = arith.maximumf %112, %113 : vector<32x96xf32>
    %c0_93 = arith.constant 0 : index
    %c0_94 = arith.constant 0 : index
    %115 = vector.load %arg12[%c0_93, %c0_94] : memref<96x128xf32, #tpu.memory_space<vmem>>, vector<96x128xf32>
    %cst_95 = arith.constant dense<0.000000e+00> : vector<32x128xf32>
    %116 = tpu.matmul %114, %115, %cst_95 {dimension_numbers = #tpu.dot_dimension_numbers<[1], [0], [0], [1], [0, 0, 1, 1], [], []>} : vector<32x96xf32>, vector<96x128xf32>, vector<32x128xf32> -> vector<32x128xf32>
    %c0_96 = arith.constant 0 : index
    %c0_97 = arith.constant 0 : index
    %117 = vector.load %arg13[%c0_96, %c0_97] : memref<1x128xf32, #tpu.memory_space<vmem>>, vector<1x128xf32>
    %118 = vector.broadcast %117 : vector<1x128xf32> to vector<32x128xf32>
    %119 = arith.addf %116, %118 : vector<32x128xf32>
    %120 = arith.subf %119, %1 : vector<32x128xf32>
    %121 = arith.mulf %120, %120 : vector<32x128xf32>
    %cst_98 = arith.constant dense<0.000000e+00> : vector<32xf32>
    %122 = vector.multi_reduction <add>, %121, %cst_98 [1] : vector<32x128xf32> to vector<32xf32>
    %123 = vector.shape_cast %122 : vector<32xf32> to vector<32x1xf32>
    %cst_99 = arith.constant 1.280000e+02 : f32
    %124 = vector.broadcast %cst_99 : f32 to vector<32x1xf32>
    %125 = arith.divf %123, %124 : vector<32x1xf32>
    %cst_100 = arith.constant dense<0.000000e+00> : vector<1xf32>
    %126 = vector.multi_reduction <add>, %125, %cst_100 [0] : vector<32x1xf32> to vector<1xf32>
    %127 = vector.shape_cast %126 : vector<1xf32> to vector<1x1xf32>
    %cst_101 = arith.constant 3.200000e+01 : f32
    %128 = vector.broadcast %cst_101 : f32 to vector<1x1xf32>
    %129 = arith.divf %127, %128 : vector<1x1xf32>
    %130 = arith.addf %107, %129 : vector<1x1xf32>
    %cst_102 = arith.constant 5.000000e-01 : f32
    %131 = vector.broadcast %cst_102 : f32 to vector<1x1xf32>
    %132 = arith.mulf %130, %131 : vector<1x1xf32>
    %c0_103 = arith.constant 0 : index
    %c0_104 = arith.constant 0 : index
    %133 = vector.load %arg16[%c0_103, %c0_104] : memref<1x1xf32, #tpu.memory_space<vmem>>, vector<1x1xf32>
    tpu.vector_store %arg16[%c0_103, %c0_104], %132 {strides = array<i32>} : memref<1x1xf32, #tpu.memory_space<vmem>>, vector<1x1xf32>,
    return
  }
}

</mosaic_0001>

<bundles_post_ra>
// kernel: _forward_impl.1
= control target key start
LH: loop header
LB: loop body
LE: loop exit
PB: predicated region body
PF: predicated region fallthrough
CT: control target
= control target key end

     0   :  { %s3901_s0 = inlined_call_operand.hbm [shape: f32[16,128], index: 0, kind: input, shape index: {}]   ;;  %s3902_s1 = inlined_call_operand.vmem [shape: f32[32,128], index: 1, kind: input, shape index: {}]   ;;  %s3903_s2 = inlined_call_operand.vmem [shape: f32[32,16], index: 2, kind: input, shape index: {}]   ;;  %s3904_s3 = inlined_call_operand.hbm [shape: f32[16,32], index: 3, kind: input, shape index: {}]   ;;  %s3905_s4 = inlined_call_operand.hbm [shape: f32[32,32], index: 4, kind: input, shape index: {}]   ;;  %s3906_s5 = inlined_call_operand.hbm [shape: f32[16,16], index: 5, kind: input, shape index: {}]   ;;  %s3907_s6 = inlined_call_operand.vmem [shape: f32[2,128,64], index: 6, kind: input, shape index: {}]   ;;  %s3908_s7 = inlined_call_operand.hbm [shape: f32[2,1,64], index: 7, kind: input, shape index: {}]   ;;  %s3909_s8 = inlined_call_operand.vmem [shape: f32[4,64,96], index: 8, kind: input, shape index: {}]   ;;  %s3910_s9 = inlined_call_operand.hbm [shape: f32[4,1,96], index: 9, kind: input, shape index: {}]   ;;  %s3911_s10 = inlined_call_operand.vmem [shape: f32[96,96], index: 10, kind: input, shape index: {}]   ;;  %s3912_s11 = inlined_call_operand.vmem [shape: f32[1,96], index: 11, kind: input, shape index: {}]   ;;  %s3913_s12 = inlined_call_operand.vmem [shape: f32[96,128], index: 12, kind: input, shape index: {}]   ;;  %s3914_s13 = inlined_call_operand.hbm [shape: f32[1,128], index: 13, kind: input, shape index: {}]   ;;  %s3915_s14 = inlined_call_operand.hbm [shape: f32[16,96], index: 14, kind: output, shape index: {0}]   ;;  %s3916_s15 = inlined_call_operand.hbm [shape: f32[32,96], index: 15, kind: output, shape index: {1}]   ;;  %s3917_s16 = inlined_call_operand.hbm [shape: f32[1,1], index: 16, kind: output, shape index: {2}]  }
   0x1   :  { %3920 = sst [smem:[#allocation24_spill]] %s3901_s0 }
   0x2   :  { %22 = vsyncpa [#allocation3], 0 }
   0x3   :  { %23 = vsyncpa [#allocation6], 0 }
   0x4   :  { %24 = vsyncpa [#allocation9], 0 }
   0x5   :  { %25 = vsyncpa [#allocation12], 0 }
   0x6   :  { %26 = vsyncpa [#allocation4], 0 }
   0x7   :  { %27 = vsyncpa [#allocation16], 0  ;;  %s3183_s21 = smov [#allocation5]   ;;  %s3184_s23 = smov [#allocation8]  }
   0x8   :  { %s49_s22 = sshll.u32 %s3183_s21, 4  ;;  %s73_s24 = sshll.u32 %s3184_s23, 4  ;;  %s50_s22 = int_to_ptr.vmem [resolvable:$true] %s49_s22  ;;  %s3282_s24 = int_to_ptr.vmem [resolvable:$true] %s73_s24 }
   0x9   :  { %s2951_s27 = scalar_lea.hbm %s3904_s3, 256 }
   0xa   :  { %p2952_p0 = scmp.ne.s32.totalorder %s3904_s3, %s2951_s27  ;;  %p2955_p1 = scmp.lt.u32.totalorder %s2951_s27, %s3904_s3 }
   0xc   :  { %p2957_p2 = pnand %p2955_p1, %p2952_p0 }
   0xe   :  { %2960 = shalt.err (!%p2957_p2)
}
   0xf   :  { %s2961_s17 = scalar_lea.vmem %s50_s22, 256  ;;  %p2966_p4 = scmp.lt.s32.totalorder %s50_s22, %s50_s22 }
  0x10   :  { %p2962_p3 = scmp.ne.s32.totalorder %s50_s22, %s2961_s17  ;;  %p2967_p5 = scmp.lt.s32.totalorder %s2961_s17, %s2961_s17 }
  0x12   :  { %p2968_p6 = por %p2967_p5, %p2966_p4 }
  0x14   :  { %p2969_p7 = pnand %p2968_p6, %p2962_p3 }
  0x16   :  { %2972 = shalt.err (!%p2969_p7)
}
  0x17   :  { %s3185_s18 = smov 128   ;;  %s3186_s19 = smov 8  }
  0x18   :  { %55 = dma.hbm_to_vmem [thread:$0]  %s3904_s3, 256, %s50_s22, [#allocation6], %s3185_s18, %s3185_s18, %s3186_s19  }
  0x19   :  { %s2973_s26 = scalar_lea.hbm %s3906_s5, 256 }
  0x1a   :  { %p2974_p8 = scmp.ne.s32.totalorder %s3906_s5, %s2973_s26  ;;  %p2977_p9 = scmp.lt.u32.totalorder %s2973_s26, %s3906_s5 }
  0x1c   :  { %p2979_p10 = pnand %p2977_p9, %p2974_p8 }
  0x1e   :  { %2982 = shalt.err (!%p2979_p10)
}
  0x1f   :  { %s2983_s0 = scalar_lea.vmem %s3282_s24, 256  ;;  %p2988_p12 = scmp.lt.s32.totalorder %s3282_s24, %s3282_s24 }
  0x20   :  { %p2984_p11 = scmp.ne.s32.totalorder %s3282_s24, %s2983_s0  ;;  %p2989_p13 = scmp.lt.s32.totalorder %s2983_s0, %s2983_s0 }
  0x22   :  { %p2990_p0 = por %p2989_p13, %p2988_p12 }
  0x24   :  { %p2991_p1 = pnand %p2990_p0, %p2984_p11 }
  0x26   :  { %2994 = shalt.err (!%p2991_p1)
}
  0x27   :  { %79 = dma.hbm_to_vmem [thread:$0]  %s3906_s5, 256, %s3282_s24, [#allocation9], %s3185_s18, %s3185_s18, %s3186_s19  }
  0x28   :  { %s3187_s17 = smov [#allocation11]   ;;  %s3188_s21 = smov [#allocation2]  }
  0x29   :  { %s101_s20 = sshll.u32 %s3187_s17, 4  ;;  %s33_s23 = sshll.u32 %s3188_s21, 4  ;;  %s102_s20 = int_to_ptr.vmem [resolvable:$true] %s101_s20  ;;  %s3319_s23 = int_to_ptr.vmem [resolvable:$true] %s33_s23 }
  0x2a   :  { %s2995_s27 = scalar_lea.hbm %s3910_s9, 64 }
  0x2b   :  { %p2996_p2 = scmp.ne.s32.totalorder %s3910_s9, %s2995_s27  ;;  %p2999_p3 = scmp.lt.u32.totalorder %s2995_s27, %s3910_s9 }
  0x2d   :  { %p3001_p4 = pnand %p2999_p3, %p2996_p2 }
  0x2f   :  { %3004 = shalt.err (!%p3001_p4)
}
  0x30   :  { %s3005_s5 = scalar_lea.vmem %s102_s20, 64  ;;  %p3010_p6 = scmp.lt.s32.totalorder %s102_s20, %s102_s20 }
  0x31   :  { %p3006_p5 = scmp.ne.s32.totalorder %s102_s20, %s3005_s5  ;;  %p3011_p7 = scmp.lt.s32.totalorder %s3005_s5, %s3005_s5 }
  0x33   :  { %p3012_p8 = por %p3011_p7, %p3010_p6 }
  0x35   :  { %p3013_p9 = pnand %p3012_p8, %p3006_p5 }
  0x37   :  { %3016 = shalt.err (!%p3013_p9)
}
  0x38   :  { %s3919_s24 = smov 16   ;;  %s3190_s3 = smov 1  }
  0x39   :  { %107 = dma.hbm_to_vmem [thread:$0]  %s3910_s9, 64, %s102_s20, [#allocation12], %s3919_s24, %s3919_s24, %s3190_s3  }
  0x3a   :  { %s3921_s26 = sld [smem:[#allocation24_spill]] }
  0x40   :  { %s3017_s27 = scalar_lea.hbm %s3921_s26, 256 }
  0x41   :  { %p3018_p10 = scmp.ne.s32.totalorder %s3921_s26, %s3017_s27  ;;  %p3021_p11 = scmp.lt.u32.totalorder %s3017_s27, %s3921_s26 }
  0x43   :  { %p3023_p12 = pnand %p3021_p11, %p3018_p10 }
  0x45   :  { %3026 = shalt.err (!%p3023_p12)
}
  0x46   :  { %s3027_s5 = scalar_lea.vmem %s3319_s23, 256  ;;  %p3032_p0 = scmp.lt.s32.totalorder %s3319_s23, %s3319_s23 }
  0x47   :  { %p3028_p13 = scmp.ne.s32.totalorder %s3319_s23, %s3027_s5  ;;  %p3033_p1 = scmp.lt.s32.totalorder %s3027_s5, %s3027_s5 }
  0x49   :  { %p3034_p2 = por %p3033_p1, %p3032_p0 }
  0x4b   :  { %p3035_p3 = pnand %p3034_p2, %p3028_p13 }
  0x4d   :  { %3038 = shalt.err (!%p3035_p3)
}
  0x4e   :  { %39 = dma.hbm_to_vmem [thread:$0]  %s3921_s26, 256, %s3319_s23, [#allocation3], %s3185_s18, %s3185_s18, %s3186_s19  }
  0x4f   :  { %s3191_s22 = smov [#allocation7]   ;;  %s3192_s21 = smov [#allocation10]  }
  0x50   :  { %s61_s17 = sshll.u32 %s3191_s22, 4  ;;  %s87_s25 = sshll.u32 %s3192_s21, 4  ;;  %s62_s17 = int_to_ptr.vmem [resolvable:$true] %s61_s17  ;;  %s3356_s25 = int_to_ptr.vmem [resolvable:$true] %s87_s25 }
  0x51   :  { %s3039_s29 = scalar_lea.hbm %s3905_s4, 512 }
  0x52   :  { %p3040_p4 = scmp.ne.s32.totalorder %s3905_s4, %s3039_s29  ;;  %p3043_p5 = scmp.lt.u32.totalorder %s3039_s29, %s3905_s4 }
  0x54   :  { %p3045_p6 = pnand %p3043_p5, %p3040_p4 }
  0x56   :  { %3048 = shalt.err (!%p3045_p6)
}
  0x57   :  { %s3049_s23 = scalar_lea.vmem %s62_s17, 512  ;;  %p3054_p8 = scmp.lt.s32.totalorder %s62_s17, %s62_s17 }
  0x58   :  { %p3050_p7 = scmp.ne.s32.totalorder %s62_s17, %s3049_s23  ;;  %p3055_p9 = scmp.lt.s32.totalorder %s3049_s23, %s3049_s23 }
  0x5a   :  { %p3056_p10 = por %p3055_p9, %p3054_p8 }
  0x5c   :  { %p3057_p11 = pnand %p3056_p10, %p3050_p7 }
  0x5e   :  { %3060 = shalt.err (!%p3057_p11)
}
  0x5f   :  { %67 = dma.hbm_to_vmem [thread:$0]  %s3905_s4, 512, %s62_s17, [#allocation6], %s3185_s18, %s3185_s18, %s3186_s19  }
  0x60   :  { %s3061_s24 = scalar_lea.hbm %s3908_s7, 32 }
  0x61   :  { %p3062_p12 = scmp.ne.s32.totalorder %s3908_s7, %s3061_s24  ;;  %p3065_p13 = scmp.lt.u32.totalorder %s3061_s24, %s3908_s7 }
  0x63   :  { %p3067_p0 = pnand %p3065_p13, %p3062_p12 }
  0x65   :  { %3070 = shalt.err (!%p3067_p0)
}
  0x66   :  { %s3071_s30 = scalar_lea.vmem %s3356_s25, 32  ;;  %p3076_p2 = scmp.lt.s32.totalorder %s3356_s25, %s3356_s25 }
  0x67   :  { %p3072_p1 = scmp.ne.s32.totalorder %s3356_s25, %s3071_s30  ;;  %p3077_p3 = scmp.lt.s32.totalorder %s3071_s30, %s3071_s30 }
  0x69   :  { %p3078_p4 = por %p3077_p3, %p3076_p2 }
  0x6b   :  { %p3079_p5 = pnand %p3078_p4, %p3072_p1 }
  0x6d   :  { %3082 = shalt.err (!%p3079_p5)
}
  0x6e   :  { %s3922_s4 = smov 16   ;;  %s3193_s5 = smov [#allocation13]  }
  0x6f   :  { %93 = dma.hbm_to_vmem [thread:$0]  %s3908_s7, 32, %s3356_s25, [#allocation9], %s3922_s4, %s3922_s4, %s3190_s3  }
  0x70   :  { %s120_s23 = sshll.u32 %s3193_s5, 4  ;;  %s3083_s20 = scalar_lea.hbm %s3914_s13, 16  ;;  %s121_s23 = int_to_ptr.vmem [resolvable:$true] %s120_s23 }
  0x71   :  { %p3084_p6 = scmp.ne.s32.totalorder %s3914_s13, %s3083_s20  ;;  %p3087_p7 = scmp.lt.u32.totalorder %s3083_s20, %s3914_s13 }
  0x73   :  { %p3089_p8 = pnand %p3087_p7, %p3084_p6 }
  0x75   :  { %3092 = shalt.err (!%p3089_p8)
}
  0x76   :  { %s3093_s28 = scalar_lea.vmem %s121_s23, 16  ;;  %s3097_s7 = scalar_lea.vmem %s121_s23, 32 }
  0x77   :  { %p3094_p9 = scmp.ne.s32.totalorder %s121_s23, %s3093_s28  ;;  %p3098_p10 = scmp.lt.s32.totalorder %s121_s23, %s121_s23 }
  0x78   :  { %p3099_p11 = scmp.lt.s32.totalorder %s3097_s7, %s3093_s28 }
  0x7a   :  { %p3100_p12 = por %p3099_p11, %p3098_p10 }
  0x7c   :  { %p3101_p13 = pnand %p3100_p12, %p3094_p9 }
  0x7e   :  { %3104 = shalt.err (!%p3101_p13)
}
  0x7f   :  { %123 = dma.hbm_to_vmem [thread:$0]  %s3914_s13, 16, %s121_s23, [#allocation12]  }
  0x80   :  { %3171 = dma.done.wait [#allocation3], 256  }
  0x81   :  { %3172 = vsyncadd [#allocation3], 4294967040 }
  0x82   :  { %3173 = dma.done.wait [#allocation6], 768  }
  0x83   :  { %3174 = vsyncadd [#allocation6], 4294966528 }
  0x84   :  { %3175 = dma.done.wait [#allocation9], 288  }
  0x85   :  { %3176 = vsyncadd [#allocation9], 4294967008 }
  0x86   :  { %3177 = dma.done.wait [#allocation12], 80  }
  0x87   :  { %3178 = vsyncadd [#allocation12], 4294967216  ;;  %v2021_v0 = vld [vmem:[%s3907_s6 + $0x80] sm:$0xff]  ;;  %v2022_v1 = vld [vmem:[%s3907_s6 + $0x88] sm:$0xff]  ;;  %vm371_vm0 = vcmask 261120   ;;  %vm459_vm1 = vcmask 130048  }
  0x88   :  { %v2023_v2 = vld [vmem:[%s3907_s6 + $0x90] sm:$0xff]  ;;  %v2691_v3 = vpack.c.bf16 %v2022_v1, %v2021_v0  ;;  %v2024_v4 = vld [vmem:[%s3907_s6 + $0x98] sm:$0xff]  ;;  %v2025_v6 = vld [vmem:[%s3907_s6 + $0xa0] sm:$0xff]  ;;  %vm780_vm2 = vcmask 523264   ;;  %vm1508_vm15 = vcmask 785408   ;;  %s3195_s4 = smov [#allocation14]  }
  0x89   :  { %v2695_v5 = vpack.c.bf16 %v2024_v4, %v2023_v2  ;;  %v2026_v7 = vld [vmem:[%s3907_s6 + $0xa8] sm:$0xff]  ;;  %v163_v8 = vld [vmem:[%s3907_s6] sm:$0xff]  ;;  %v165_v12 = vld [vmem:[%s3907_s6 + $0x10] sm:$0xff]  ;;  %s1976_s17 = sshll.u32 %s3195_s4, 4  ;;  %s3852_s17 = int_to_ptr.vmem [resolvable:$true] %s1976_s17 }
  0x8a   :  { %2692 = vmatprep.subr.bf16.mxu1 %v2691_v3  ;;  %v164_v9 = vld [vmem:[%s3907_s6 + $0x8] sm:$0xff]  ;;  %v2699_v10 = vpack.c.bf16 %v2026_v7, %v2025_v6  ;;  %v166_v13 = vld [vmem:[%s3907_s6 + $0x18] sm:$0xff]  ;;  %v2027_v14 = vld [vmem:[%s3907_s6 + $0xb0] sm:$0xff] }
  0x8b   :  { %2694 = vmatpush3.bf16.msra.mxu1 %v2691_v3  ;;  %v2659_v11 = vpack.c.bf16 %v164_v9, %v163_v8  ;;  %v2028_v15 = vld [vmem:[%s3907_s6 + $0xb8] sm:$0xff]  ;;  %v2663_v16 = vpack.c.bf16 %v166_v13, %v165_v12  ;;  %v167_v17 = vld [vmem:[%s3907_s6 + $0x20] sm:$0xff]  ;;  %v168_v18 = vld [vmem:[%s3907_s6 + $0x28] sm:$0xff] }
  0x8c   :  { %2696 = vmatprep.subr.bf16.mxu1 %v2695_v5  ;;  %v3450_v19 = vld [vmem:[%s3902_s1] sm:$0xff]  ;;  %v2703_v20 = vpack.c.bf16 %v2028_v15, %v2027_v14  ;;  %v2667_v22 = vpack.c.bf16 %v168_v18, %v167_v17  ;;  %v2030_v23 = vld [vmem:[%s3907_s6 + $0xc8] sm:$0xff]  ;;  %v169_v24 = vld [vmem:[%s3907_s6 + $0x30] sm:$0xff] }
  0x8d   :  { %2660 = vmatprep.subr.bf16.mxu0 %v2659_v11  ;;  %v2029_v21 = vld [vmem:[%s3907_s6 + $0xc0] sm:$0xff]  ;;  %2373 = vmatprep.mubr.f32.mxu1 %v3450_v19  ;;  %v170_v25 = vld [vmem:[%s3907_s6 + $0x38] sm:$0xff]  ;;  %v2031_v28 = vld [vmem:[%s3907_s6 + $0xd0] sm:$0xff] }
  0x8e   :  { %2662 = vmatpush3.bf16.msra.mxu0 %v2659_v11  ;;  %v3465_v26 = vld [vmem:[#allocation2] sm:$0xff]  ;;  %v2707_v27 = vpack.c.bf16 %v2030_v23, %v2029_v21  ;;  %v2671_v29 = vpack.c.bf16 %v170_v25, %v169_v24  ;;  %v2032_v30 = vld [vmem:[%s3907_s6 + $0xd8] sm:$0xff]  ;;  %v172_v32 = vld [vmem:[%s3907_s6 + $0x48] sm:$0xff] }
  0x8f   :  { %2698 = vmatpush3.bf16.msra.mxu1 %v2695_v5  ;;  %2664 = vmatprep.subr.bf16.mxu0 %v2663_v16  ;;  %v171_v31 = vld [vmem:[%s3907_s6 + $0x40] sm:$0xff]  ;;  %v2711_v33 = vpack.c.bf16 %v2032_v30, %v2031_v28  ;;  %v2034_v36 = vld [vmem:[%s3907_s6 + $0xe8] sm:$0xff]  ;;  %v173_v37 = vld [vmem:[%s3907_s6 + $0x50] sm:$0xff] }
  0x90   :  { %2700 = vmatprep.subr.bf16.mxu1 %v2699_v10  ;;  %2338 = vmatprep.mubr.f32.mxu0 %v3465_v26  ;;  %v2033_v34 = vld [vmem:[%s3907_s6 + $0xe0] sm:$0xff]  ;;  %v2675_v35 = vpack.c.bf16 %v172_v32, %v171_v31  ;;  %v174_v38 = vld [vmem:[%s3907_s6 + $0x58] sm:$0xff]  ;;  %v2035_v40 = vld [vmem:[%s3907_s6 + $0xf0] sm:$0xff] }
  0x91   :  { %v2715_v39 = vpack.c.bf16 %v2034_v36, %v2033_v34  ;;  %v2679_v41 = vpack.c.bf16 %v174_v38, %v173_v37  ;;  %v2036_v42 = vld [vmem:[%s3907_s6 + $0xf8] sm:$0xff]  ;;  %v175_v43 = vld [vmem:[%s3907_s6 + $0x60] sm:$0xff]  ;;  %v176_v44 = vld [vmem:[%s3907_s6 + $0x68] sm:$0xff] }
  0x92   :  { %2666 = vmatpush3.bf16.msra.mxu0 %v2663_v16  ;;  %v2719_v45 = vpack.c.bf16 %v2036_v42, %v2035_v40  ;;  %v2683_v46 = vpack.c.bf16 %v176_v44, %v175_v43  ;;  %v177_v47 = vld [vmem:[%s3907_s6 + $0x70] sm:$0xff]  ;;  %v178_v48 = vld [vmem:[%s3907_s6 + $0x78] sm:$0xff]  ;;  %v3513_v50 = vld [vmem:[%s3902_s1 + $0x8] sm:$0xff] }
  0x93   :  { %2702 = vmatpush3.bf16.msra.mxu1 %v2699_v10  ;;  %2668 = vmatprep.subr.bf16.mxu0 %v2667_v22  ;;  %v2687_v49 = vpack.c.bf16 %v178_v48, %v177_v47  ;;  %v3518_v51 = vld [vmem:[%s3902_s1 + $0x10] sm:$0xff]  ;;  %v3525_v52 = vld [vmem:[%s3902_s1 + $0x18] sm:$0xff]  ;;  %v3527_v53 = vld [vmem:[#allocation2 + $0x8] sm:$0xff] }
  0x94   :  { %2704 = vmatprep.subr.bf16.mxu1 %v2703_v20  ;;  %v3531_v54 = vld [vmem:[#allocation5] sm:$0xff]  ;;  %v3538_v55 = vld [vmem:[%s3903_s2] sm:$0xff]  ;;  %v3542_v9 = vld [vmem:[#allocation5 + $0x8] sm:$0xff] }
  0x95   :  { %v2037_v56 = vld [vmem:[#allocation10 + $0x1] ss:$0 sm:$0xff]  ;;  %v2020_v61 = vld [vmem:[#allocation10] ss:$0 sm:$0xff]  ;;  %v3547_v10 = vld [vmem:[%s3903_s2 + $0x8] sm:$0xff] }
  0x96   :  { %2670 = vmatpush3.bf16.msra.mxu0 %v2667_v22  ;;  %v3549_v11 = vld [vmem:[#allocation7] sm:$0xff]  ;;  %v766_v13 = vld [vmem:[%s3909_s8 + $0x8] sm:$0xff]  ;;  %v3564_v14 = vld [vmem:[%s3903_s2 + $0x10] sm:$0xff] }
  0x97   :  { %2706 = vmatpush3.bf16.msra.mxu1 %v2703_v20  ;;  %2672 = vmatprep.subr.bf16.mxu0 %v2671_v29  ;;  %v765_v12 = vld [vmem:[%s3909_s8] sm:$0xff]  ;;  %v3571_v15 = vld [vmem:[%s3903_s2 + $0x18] sm:$0xff]  ;;  %v767_v18 = vld [vmem:[%s3909_s8 + $0x10] sm:$0xff] }
  0x98   :  { %2708 = vmatprep.subr.bf16.mxu1 %v2707_v27  ;;  %v3573_v16 = vld [vmem:[#allocation8] sm:$0xff]  ;;  %v2747_v17 = vpack.c.bf16 %v766_v13, %v765_v12  ;;  %v768_v20 = vld [vmem:[%s3909_s8 + $0x18] sm:$0xff]  ;;  %v3585_v21 = vld [vmem:[#allocation7 + $0x8] sm:$0xff] }
  0x99   :  { %v3589_v22 = vld [vmem:[#allocation8 + $0x8] sm:$0xff]  ;;  %v3591_v23 = vld [vmem:[#allocation7 + $0x10] sm:$0xff]  ;;  %v2751_v24 = vpack.c.bf16 %v768_v20, %v767_v18  ;;  %v769_v25 = vld [vmem:[%s3909_s8 + $0x20] sm:$0xff] }
  0x9a   :  { %2674 = vmatpush3.bf16.msra.mxu0 %v2671_v29  ;;  %v3605_v28 = vld [vmem:[#allocation7 + $0x18] sm:$0xff]  ;;  %v771_v30 = vld [vmem:[%s3909_s8 + $0x30] sm:$0xff]  ;;  %v2067_v34 = vld [vmem:[%s3909_s8 + $0x88] sm:$0xff] }
  0x9b   :  { %2710 = vmatpush3.bf16.msra.mxu1 %v2707_v27  ;;  %2676 = vmatprep.subr.bf16.mxu0 %v2675_v35  ;;  %v770_v27 = vld [vmem:[%s3909_s8 + $0x28] sm:$0xff]  ;;  %v772_v31 = vld [vmem:[%s3909_s8 + $0x38] sm:$0xff]  ;;  %v2053_v36 = vld [vmem:[%s3909_s8 + $0x40] sm:$0xff] }
  0x9c   :  { %2712 = vmatprep.subr.bf16.mxu1 %v2711_v33  ;;  %v2755_v29 = vpack.c.bf16 %v770_v27, %v769_v25  ;;  %v2759_v32 = vpack.c.bf16 %v772_v31, %v771_v30  ;;  %v2054_v37 = vld [vmem:[%s3909_s8 + $0x48] sm:$0xff]  ;;  %v2056_v40 = vld [vmem:[%s3909_s8 + $0x58] sm:$0xff]  ;;  %v2057_v42 = vld [vmem:[%s3909_s8 + $0x60] sm:$0xff] }
  0x9d   :  { %v2763_v38 = vpack.c.bf16 %v2054_v37, %v2053_v36  ;;  %v2058_v43 = vld [vmem:[%s3909_s8 + $0x68] sm:$0xff]  ;;  %v2073_v30 = vld [vmem:[%s3909_s8 + $0xb8] sm:$0xff]  ;;  %v2087_v37 = vld [vmem:[%s3909_s8 + $0xc0] sm:$0xff] }
  0x9e   :  { %2678 = vmatpush3.bf16.msra.mxu0 %v2675_v35  ;;  %v2771_v44 = vpack.c.bf16 %v2058_v43, %v2057_v42  ;;  %v2090_v42 = vld [vmem:[%s3909_s8 + $0xd8] sm:$0xff] }
  0x9f   :  { %2714 = vmatpush3.bf16.msra.mxu1 %v2711_v33  ;;  %2680 = vmatprep.subr.bf16.mxu0 %v2679_v41  ;;  %v2066_v33 = vld [vmem:[%s3909_s8 + $0x80] sm:$0xff] }
  0xa0   :  { %2716 = vmatprep.subr.bf16.mxu1 %v2715_v39  ;;  %v2779_v35 = vpack.c.bf16 %v2067_v34, %v2066_v33 }
  0xa2   :  { %2682 = vmatpush3.bf16.msra.mxu0 %v2679_v41 }
  0xa3   :  { %2718 = vmatpush3.bf16.msra.mxu1 %v2715_v39  ;;  %2684 = vmatprep.subr.bf16.mxu0 %v2683_v46  ;;  %v2055_v39 = vld [vmem:[%s3909_s8 + $0x50] sm:$0xff] }
  0xa4   :  { %2720 = vmatprep.subr.bf16.mxu1 %v2719_v45  ;;  %v2767_v41 = vpack.c.bf16 %v2056_v40, %v2055_v39 }
  0xa6   :  { %2686 = vmatpush3.bf16.msra.mxu0 %v2683_v46  ;;  %v2060_v46 = vld [vmem:[%s3909_s8 + $0x78] sm:$0xff] }
  0xa7   :  { %2722 = vmatpush3.bf16.msra.mxu1 %v2719_v45  ;;  %2688 = vmatprep.subr.bf16.mxu0 %v2687_v49  ;;  %v2059_v45 = vld [vmem:[%s3909_s8 + $0x70] sm:$0xff] }
  0xa8   :  { %v2775_v47 = vpack.c.bf16 %v2060_v46, %v2059_v45 }
  0xaa   :  { %2374 = vmatmul.mubr.f32.vlgmr.msra.gmra.mrb[0].mxu1 %v3513_v50  ;;  %2690 = vmatpush3.bf16.msra.mxu0 %v2687_v49  ;;  %v2068_v49 = vld [vmem:[%s3909_s8 + $0x90] sm:$0xff] }
  0xab   :  { %2376 = vmatprep.mubr.f32.mxu1 %v3518_v51 }
  0xad   :  { %2339 = vmatmul.mubr.f32.vlgmr.msra.gmra.mrb[0].mxu0 %v3527_v53 }
  0xae   :  { %2377 = vmatmul.mubr.f32.gmra.mrb[2].mxu1 %v3525_v52  ;;  %2387 = vmatprep.mubr.msk.f32.mxu0 %vm371_vm0, %v3531_v54 }
  0xaf   :  { %2394 = vmatprep.mubr.msk.f32.mxu1 %vm459_vm1, %v3538_v55 }
 0x17d   :  { %v2375_v57 = vpop.f32.mrb[0].mxu1 }
 0x17e   :  { %v358_v58 = vadd.f32 %v2375_v57, %v2037_v56  ;;  %v352_v59 = vpop.f32.mrb[1].mxu1 }
 0x17f   :  { %v353_v60 = vadd.f32 %v2037_v56, %v352_v59 }
 0x180   :  { %v2340_v0 = vpop.f32.mrb[0].mxu0 }
 0x181   :  { %v2723_v62 = vpack.c.bf16 %v358_v58, %v353_v60  ;;  %v2378_v63 = vpop.f32.mrb[2].mxu1  ;;  %v258_v3 = vadd.f32 %v2340_v0, %v2020_v61  ;;  %v252_v4 = vpop.f32.mrb[1].mxu0 }
 0x182   :  { %v368_v1 = vadd.f32 %v2378_v63, %v2037_v56  ;;  %v362_v2 = vpop.f32.mrb[3].mxu1  ;;  %v253_v6 = vadd.f32 %v2020_v61, %v252_v4 }
 0x183   :  { %v363_v5 = vadd.f32 %v2037_v56, %v362_v2  ;;  %2724 = vmatprep.subr.bf16.mxu0 %v2723_v62  ;;  %v2069_v56 = vld [vmem:[%s3909_s8 + $0x98] sm:$0xff] }
 0x184   :  { %2726 = vmatpush3.bf16.msra.mxu0 %v2723_v62  ;;  %v2731_v8 = vpack.c.bf16 %v258_v3, %v253_v6  ;;  %v2071_v6 = vld [vmem:[%s3909_s8 + $0xa8] sm:$0xff] }
 0x185   :  { %v2727_v7 = vpack.c.bf16 %v368_v1, %v363_v5  ;;  %v2783_v1 = vpack.c.bf16 %v2069_v56, %v2068_v49  ;;  %v2070_v5 = vld [vmem:[%s3909_s8 + $0xa0] sm:$0xff]  ;;  %v2092_v49 = vld [vmem:[%s3909_s8 + $0xe8] sm:$0xff] }
 0x186   :  { %2732 = vmatprep.subr.bf16.mxu1 %v2731_v8  ;;  %v2787_v18 = vpack.c.bf16 %v2071_v6, %v2070_v5  ;;  %v2050_v6 = vld [vmem:[#allocation11] ss:$0 sm:$0xff] }
 0x187   :  { %2728 = vmatprep.subr.bf16.mxu0 %v2727_v7  ;;  %2734 = vmatpush3.bf16.msra.mxu1 %v2731_v8 }
 0x188   :  { %2730 = vmatpush3.bf16.msra.mxu0 %v2727_v7  ;;  %2744 = vmatprep.subr.bf16.mxu1 %v2731_v8 }
 0x189   :  { %2736 = vmatprep.subr.bf16.mxu0 %v2723_v62 }
 0x18a   :  { %2395 = vmatmul.mubr.msk.f32.vlgmr.msra.gmra.mrb[4].mxu1 %vm459_vm1, %v3547_v10 }
 0x18b   :  { %2388 = vmatmul.mubr.msk.f32.vlgmr.msra.gmra.mrb[2].mxu0 %vm371_vm0, %v3542_v9  ;;  %2746 = vmatpush3.bf16.msra.mxu1 %v2731_v8 }
 0x18c   :  { %2738 = vmatpush3.bf16.msra.mxu0 %v2723_v62  ;;  %2408 = vmatprep.mubr.msk.f32.mxu0 %vm371_vm0, %v3549_v11 }
 0x18d   :  { %2740 = vmatprep.subr.bf16.mxu0 %v2727_v7  ;;  %2397 = vmatprep.mubr.msk.f32.mxu1 %vm459_vm1, %v3564_v14 }
 0x18e   :  { %2398 = vmatmul.mubr.msk.f32.gmra.mrb[6].mxu1 %vm459_vm1, %v3571_v15  ;;  %2764 = vmatprep.subr.bf16.mxu1 %v2763_v38 }
 0x18f   :  { %2418 = vmatprep.mubr.msk.f32.mxu1 %vm459_vm1, %v3573_v16 }
 0x190   :  { %2742 = vmatpush3.bf16.msra.mxu0 %v2727_v7 }
 0x191   :  { %2748 = vmatprep.subr.bf16.mxu0 %v2747_v17 }
 0x192   :  { %2419 = vmatmul.mubr.msk.f32.vlgmr.msra.gmra.mrb[8].mxu1 %vm459_vm1, %v3589_v22 }
 0x193   :  { %2409 = vmatmul.mubr.msk.f32.vlgmr.msra.gmra.mrb[4].mxu0 %vm371_vm0, %v3585_v21  ;;  %2766 = vmatpush3.bf16.msra.mxu1 %v2763_v38  ;;  %v2088_v38 = vld [vmem:[%s3909_s8 + $0xc8] sm:$0xff] }
 0x194   :  { %2411 = vmatprep.mubr.msk.f32.mxu0 %vm371_vm0, %v3591_v23  ;;  %2750 = vmatpush3.bf16.msra.mxu0 %v2747_v17  ;;  %v2807_v40 = vpack.c.bf16 %v2088_v38, %v2087_v37 }
 0x195   :  { %2752 = vmatprep.subr.bf16.mxu0 %v2751_v24  ;;  %2768 = vmatprep.subr.bf16.mxu1 %v2767_v41 }
 0x197   :  { %2412 = vmatmul.mubr.msk.f32.gmra.mrb[6].mxu0 %vm371_vm0, %v3605_v28  ;;  %2770 = vmatpush3.bf16.msra.mxu1 %v2767_v41 }
 0x198   :  { %2754 = vmatpush3.bf16.msra.mxu0 %v2751_v24  ;;  %2772 = vmatprep.subr.bf16.mxu1 %v2771_v44 }
 0x199   :  { %2756 = vmatprep.subr.bf16.mxu0 %v2755_v29 }
 0x19b   :  { %2774 = vmatpush3.bf16.msra.mxu1 %v2771_v44 }
 0x19c   :  { %2758 = vmatpush3.bf16.msra.mxu0 %v2755_v29  ;;  %2776 = vmatprep.subr.bf16.mxu1 %v2775_v47  ;;  %v2072_v29 = vld [vmem:[%s3909_s8 + $0xb0] sm:$0xff] }
 0x19d   :  { %2760 = vmatprep.subr.bf16.mxu0 %v2759_v32  ;;  %v2791_v34 = vpack.c.bf16 %v2073_v30, %v2072_v29 }
 0x19f   :  { %2778 = vmatpush3.bf16.msra.mxu1 %v2775_v47 }
 0x1a0   :  { %2762 = vmatpush3.bf16.msra.mxu0 %v2759_v32 }
 0x1a1   :  { %2780 = vmatprep.subr.bf16.mxu0 %v2779_v35 }
 0x25d   :  { %v2396_v57 = vpop.f32.mrb[4].mxu1 }
 0x25e   :  { %v2389_v48 = vpop.f32.mrb[2].mxu0  ;;  %vm558_vm4 = vcmp.ge.f32.partialorder %v2396_v57, 0.0  ;;  %v538_v60 = vpop.f32.mrb[5].mxu1  ;;  %v562_v62 = vmul.f32 0.01, %v2396_v57 }
 0x25f   :  { %vm454_vm3 = vcmp.ge.f32.partialorder %v2389_v48, 0.0  ;;  %v456_v58 = vmul.f32 0.01, %v2389_v48  ;;  %v444_v59 = vpop.f32.mrb[3].mxu0  ;;  %vm557_vm6 = vcmp.ge.f32.partialorder %v538_v60, 0.0 }
 0x260   :  { %vm453_vm5 = vcmp.ge.f32.partialorder %v444_v59, 0.0  ;;  %v455_v61 = vmul.f32 0.01, %v444_v59  ;;  %v561_v63 = vmul.f32 0.01, %v538_v60  ;;  %v566_v2 = vsel %vm558_vm4, %v2396_v57, %v562_v62 }
 0x261   :  { %v2399_v3 = vpop.f32.mrb[6].mxu1  ;;  %v458_v4 = vsel %vm454_vm3, %v2389_v48, %v456_v58  ;;  %v2091_v48 = vld [vmem:[%s3909_s8 + $0xe0] sm:$0xff] }
 0x262   :  { %v457_v0 = vsel %vm453_vm5, %v444_v59, %v455_v61  ;;  %vm560_vm7 = vcmp.ge.f32.partialorder %v2399_v3, 0.0  ;;  %v564_v7 = vmul.f32 0.01, %v2399_v3  ;;  %v548_v8 = vpop.f32.mrb[7].mxu1  ;;  %v565_v12 = vsel %vm557_vm6, %v538_v60, %v561_v63  ;;  %v2093_v59 = vld [vmem:[%s3909_s8 + $0xf0] sm:$0xff]  ;;  %v2094_v60 = vld [vmem:[%s3909_s8 + $0xf8] sm:$0xff] }
 0x263   :  { %2437 = vmatprep.mubr.msk.f32.mxu0 %vm780_vm2, %v457_v0  ;;  %vm559_vm8 = vcmp.ge.f32.partialorder %v548_v8, 0.0  ;;  %v563_v13 = vmul.f32 0.01, %v548_v8  ;;  %2456 = vmatprep.mubr.msk.f32.mxu1 %vm780_vm2, %v565_v12  ;;  %v2815_v56 = vpack.c.bf16 %v2092_v49, %v2091_v48  ;;  %v2819_v61 = vpack.c.bf16 %v2094_v60, %v2093_v59  ;;  %v1515_v0 = vld [vmem:[%s3911_s10] sm:$0xff]  ;;  %v1618_v59 = vld [vmem:[%s3913_s12 + $0x8] sm:$0xff]  ;;  %v1619_v60 = vld [vmem:[%s3913_s12 + $0x10] sm:$0xff] }
 0x264   :  { %2438 = vmatmul.mubr.msk.f32.vlgmr.msra.gmra.mrb[8].mxu0 %vm780_vm2, %v458_v4  ;;  %2457 = vmatmul.mubr.msk.f32.vlgmr.msra.gmra.mrb[10].mxu1 %vm780_vm2, %v566_v2  ;;  %v568_v25 = vsel %vm560_vm7, %v2399_v3, %v564_v7  ;;  %v1517_v2 = vld [vmem:[%s3911_s10 + $0x10] sm:$0xff]  ;;  %v1518_v4 = vld [vmem:[%s3911_s10 + $0x18] sm:$0xff] }
 0x265   :  { %2782 = vmatpush3.bf16.msra.mxu0 %v2779_v35  ;;  %v567_v20 = vsel %vm559_vm8, %v548_v8, %v563_v13  ;;  %v2420_v24 = vpop.f32.mrb[8].mxu1  ;;  %v3715_v5 = vpack.c.bf16 %v1518_v4, %v1517_v2  ;;  %v2061_v7 = vld [vmem:[#allocation11 + $0x1] ss:$0 sm:$0xff] }
 0x266   :  { %2784 = vmatprep.subr.bf16.mxu0 %v2783_v1  ;;  %v2410_v17 = vpop.f32.mrb[4].mxu0  ;;  %2459 = vmatprep.mubr.msk.f32.mxu1 %vm780_vm2, %v567_v20  ;;  %v750_v31 = vpop.f32.mrb[9].mxu1  ;;  %v762_v62 = vmul.f32 0.01, %v2420_v24  ;;  %vm760_vm14 = vcmp.ge.f32.partialorder %v2420_v24, 0.0  ;;  %v1623_v4 = vld [vmem:[%s3913_s12 + $0x30] sm:$0xff] }
 0x267   :  { %v647_v27 = vpop.f32.mrb[5].mxu0  ;;  %v671_v41 = vmul.f32 0.01, %v2410_v17  ;;  %vm667_vm11 = vcmp.ge.f32.partialorder %v2410_v17, 0.0  ;;  %v761_v45 = vmul.f32 0.01, %v750_v31 }
 0x268   :  { %vm666_vm9 = vcmp.ge.f32.partialorder %v647_v27, 0.0  ;;  %v670_v32 = vmul.f32 0.01, %v647_v27  ;;  %2460 = vmatmul.mubr.msk.f32.gmra.mrb[12].mxu1 %vm780_vm2, %v568_v25  ;;  %vm759_vm12 = vcmp.ge.f32.partialorder %v750_v31, 0.0  ;;  %v764_v63 = vsel %vm760_vm14, %v2420_v24, %v762_v62  ;;  %v1620_v62 = vld [vmem:[%s3913_s12 + $0x18] sm:$0xff] }
 0x269   :  { %2786 = vmatpush3.bf16.msra.mxu0 %v2783_v1  ;;  %2492 = vmatprep.mubr.msk.f32.mxu1 %vm371_vm0, %v3549_v11  ;;  %v2089_v11 = vld [vmem:[%s3909_s8 + $0xd0] sm:$0xff]  ;;  %v675_v46 = vsel %vm667_vm11, %v2410_v17, %v671_v41  ;;  %v763_v57 = vsel %vm759_vm12, %v750_v31, %v761_v45  ;;  %v1516_v1 = vld [vmem:[%s3911_s10 + $0x8] sm:$0xff] }
 0x26a   :  { %2788 = vmatprep.subr.bf16.mxu0 %v2787_v18  ;;  %v2413_v33 = vpop.f32.mrb[6].mxu0  ;;  %v674_v35 = vsel %vm666_vm9, %v647_v27, %v670_v32  ;;  %v2811_v44 = vpack.c.bf16 %v2090_v42, %v2089_v11  ;;  %v3710_v3 = vpack.c.bf16 %v1516_v1, %v1515_v0  ;;  %v2095_v45 = vld [vmem:[#allocation11 + $0x3] ss:$0 sm:$0xff]  ;;  %v1621_v0 = vld [vmem:[%s3913_s12 + $0x20] sm:$0xff]  ;;  %v1622_v1 = vld [vmem:[%s3913_s12 + $0x28] sm:$0xff] }
 0x26b   :  { %v657_v36 = vpop.f32.mrb[7].mxu0  ;;  %2478 = vmatprep.mubr.msk.f32.mxu0 %vm780_vm2, %v674_v35  ;;  %v673_v47 = vmul.f32 0.01, %v2413_v33  ;;  %vm669_vm13 = vcmp.ge.f32.partialorder %v2413_v33, 0.0  ;;  %v2074_v35 = vld [vmem:[#allocation11 + $0x2] ss:$0 sm:$0xff]  ;;  %v2867_v2 = vpack.c.bf16 %v1622_v1, %v1621_v0 }
 0x26c   :  { %v672_v39 = vmul.f32 0.01, %v657_v36  ;;  %vm668_vm10 = vcmp.ge.f32.partialorder %v657_v36, 0.0 }
 0x26d   :  { %2790 = vmatpush3.bf16.msra.mxu0 %v2787_v18  ;;  %v677_v58 = vsel %vm669_vm13, %v2413_v33, %v673_v47 }
 0x26e   :  { %2792 = vmatprep.subr.bf16.mxu0 %v2791_v34  ;;  %v676_v43 = vsel %vm668_vm10, %v657_v36, %v672_v39 }
 0x271   :  { %2794 = vmatpush3.bf16.msra.mxu0 %v2791_v34 }
 0x272   :  { %2808 = vmatprep.subr.bf16.mxu0 %v2807_v40 }
 0x274   :  { %2479 = vmatmul.mubr.msk.f32.vlgmr.msra.gmra.mrb[10].mxu0 %vm780_vm2, %v675_v46 }
 0x275   :  { %2481 = vmatprep.mubr.msk.f32.mxu0 %vm780_vm2, %v676_v43  ;;  %2810 = vmatpush3.bf16.msra.mxu0 %v2807_v40 }
 0x276   :  { %2812 = vmatprep.subr.bf16.mxu0 %v2811_v44 }
 0x278   :  { %2482 = vmatmul.mubr.msk.f32.gmra.mrb[12].mxu0 %vm780_vm2, %v677_v58  ;;  %v1617_v58 = vld [vmem:[%s3913_s12] sm:$0xff] }
 0x279   :  { %2814 = vmatpush3.bf16.msra.mxu0 %v2811_v44  ;;  %2524 = vmatprep.mubr.msk.f32.mxu0 %vm780_vm2, %v763_v57 }
 0x27a   :  { %2816 = vmatprep.subr.bf16.mxu0 %v2815_v56 }
 0x27d   :  { %2818 = vmatpush3.bf16.msra.mxu0 %v2815_v56 }
 0x27e   :  { %2820 = vmatprep.subr.bf16.mxu0 %v2819_v61 }
 0x281   :  { %2822 = vmatpush3.bf16.msra.mxu0 %v2819_v61  ;;  %v3781_v61 = vpack.c.bf16 %v1618_v59, %v1617_v58 }
 0x282   :  { %2836 = vmatprep.subr.bf16.mxu0 %v3710_v3 }
 0x284   :  { %2525 = vmatmul.mubr.msk.f32.vlgmr.msra.gmra.mrb[14].mxu0 %vm780_vm2, %v764_v63  ;;  %v3786_v63 = vpack.c.bf16 %v1620_v62, %v1619_v60 }
 0x285   :  { %2838 = vmatpush3.bf16.msra.mxu0 %v3710_v3 }
 0x286   :  { %2840 = vmatprep.subr.bf16.mxu0 %v3715_v5 }
 0x289   :  { %2842 = vmatpush3.bf16.msra.mxu0 %v3715_v5 }
 0x337   :  { %v2439_v8 = vpop.f32.mrb[8].mxu0  ;;  %v2458_v17 = vpop.f32.mrb[10].mxu1 }
 0x338   :  { %v859_v12 = vadd.f32 %v2439_v8, %v2050_v6  ;;  %v853_v13 = vpop.f32.mrb[9].mxu0  ;;  %v963_v20 = vadd.f32 %v2458_v17, %v2061_v7  ;;  %v957_v24 = vpop.f32.mrb[11].mxu1  ;;  %v1625_v8 = vld [vmem:[%s3913_s12 + $0x40] sm:$0xff] }
 0x339   :  { %v854_v18 = vadd.f32 %v2050_v6, %v853_v13  ;;  %v958_v25 = vadd.f32 %v2061_v7, %v957_v24  ;;  %v1624_v6 = vld [vmem:[%s3913_s12 + $0x38] sm:$0xff] }
 0x33b   :  { %v2803_v27 = vpack.c.bf16 %v859_v12, %v854_v18  ;;  %v2827_v29 = vpack.c.bf16 %v963_v20, %v958_v25  ;;  %v2461_v30 = vpop.f32.mrb[12].mxu1  ;;  %v1626_v12 = vld [vmem:[%s3913_s12 + $0x48] sm:$0xff] }
 0x33c   :  { %v973_v31 = vadd.f32 %v2461_v30, %v2061_v7  ;;  %v967_v32 = vpop.f32.mrb[13].mxu1  ;;  %v2875_v13 = vpack.c.bf16 %v1626_v12, %v1625_v8  ;;  %v2102_v30 = vld [vmem:[%s3912_s11] ss:$0 sm:$0xff]  ;;  %s3194_s11 = smov [#allocation15]  }
 0x33d   :  { %v968_v33 = vadd.f32 %v2061_v7, %v967_v32  ;;  %v2871_v7 = vpack.c.bf16 %v1624_v6, %v1623_v4 }
 0x33f   :  { %v2831_v34 = vpack.c.bf16 %v973_v31, %v968_v33 }
 0x347   :  { %v2480_v36 = vpop.f32.mrb[10].mxu0 }
 0x348   :  { %v1077_v37 = vadd.f32 %v2480_v36, %v2074_v35  ;;  %v1071_v38 = vpop.f32.mrb[11].mxu0 }
 0x349   :  { %v1072_v39 = vadd.f32 %v2074_v35, %v1071_v38 }
 0x34b   :  { %v2795_v40 = vpack.c.bf16 %v1077_v37, %v1072_v39  ;;  %v2483_v41 = vpop.f32.mrb[12].mxu0 }
 0x34c   :  { %v1087_v11 = vadd.f32 %v2483_v41, %v2074_v35  ;;  %v1081_v42 = vpop.f32.mrb[13].mxu0 }
 0x34d   :  { %v1082_v43 = vadd.f32 %v2074_v35, %v1081_v42  ;;  %2796 = vmatprep.subr.bf16.mxu1 %v2795_v40 }
 0x34e   :  { %2798 = vmatpush3.bf16.msra.mxu1 %v2795_v40 }
 0x34f   :  { %v2799_v44 = vpack.c.bf16 %v1087_v11, %v1082_v43 }
 0x351   :  { %2800 = vmatprep.subr.bf16.mxu1 %v2799_v44 }
 0x352   :  { %2802 = vmatpush3.bf16.msra.mxu1 %v2799_v44 }
 0x353   :  { %2804 = vmatprep.subr.bf16.mxu1 %v2803_v27 }
 0x355   :  { %2493 = vmatmul.mubr.msk.f32.vlgmr.msra.gmra.mrb[14].mxu1 %vm371_vm0, %v3585_v21  ;;  %v1524_v21 = vld [vmem:[%s3911_s10 + $0x48] sm:$0xff] }
 0x356   :  { %2806 = vmatpush3.bf16.msra.mxu1 %v2803_v27  ;;  %2495 = vmatprep.mubr.msk.f32.mxu1 %vm371_vm0, %v3591_v23 }
 0x357   :  { %v2526_v46 = vpop.f32.mrb[14].mxu0 }
 0x358   :  { %v1355_v47 = vadd.f32 %v2526_v46, %v2095_v45  ;;  %v1349_v48 = vpop.f32.mrb[15].mxu0 }
 0x359   :  { %v1350_v49 = vadd.f32 %v2095_v45, %v1349_v48  ;;  %2496 = vmatmul.mubr.msk.f32.gmra.mrb[16].mxu1 %vm371_vm0, %v3605_v28  ;;  %v1526_v28 = vld [vmem:[%s3911_s10 + $0x58] sm:$0xff]  ;;  %v2105_v48 = vld [vmem:[#allocation13] ss:$0 sm:$0xff] }
 0x35a   :  { %2502 = vmatprep.mubr.msk.f32.mxu1 %vm459_vm1, %v3538_v55  ;;  %v1519_v55 = vld [vmem:[%s3911_s10 + $0x20] sm:$0xff] }
 0x35b   :  { %v2823_v56 = vpack.c.bf16 %v1355_v47, %v1350_v49 }
 0x35d   :  { %2503 = vmatmul.mubr.msk.f32.vlgmr.msra.gmra.mrb[14].mxu1 %vm459_vm1, %v3547_v10  ;;  %2824 = vmatprep.subr.bf16.mxu1 %v2823_v56  ;;  %v1520_v10 = vld [vmem:[%s3911_s10 + $0x28] sm:$0xff] }
 0x35e   :  { %2826 = vmatpush3.bf16.msra.mxu1 %v2823_v56  ;;  %2505 = vmatprep.mubr.msk.f32.mxu1 %vm459_vm1, %v3564_v14  ;;  %v3749_v14 = vpack.c.bf16 %v1520_v10, %v1519_v55 }
 0x35f   :  { %2828 = vmatprep.subr.bf16.mxu1 %v2827_v29 }
 0x360   :  { %2844 = vmatprep.subr.bf16.mxu0 %v3749_v14 }
 0x361   :  { %2506 = vmatmul.mubr.msk.f32.gmra.mrb[16].mxu1 %vm459_vm1, %v3571_v15  ;;  %2846 = vmatpush3.bf16.msra.mxu0 %v3749_v14 }
 0x362   :  { %2531 = vmatprep.mubr.msk.f32.mxu1 %vm459_vm1, %v3573_v16  ;;  %v1523_v16 = vld [vmem:[%s3911_s10 + $0x40] sm:$0xff] }
 0x363   :  { %v2851_v23 = vpack.c.bf16 %v1524_v21, %v1523_v16 }
 0x365   :  { %2532 = vmatmul.mubr.msk.f32.vlgmr.msra.gmra.mrb[18].mxu1 %vm459_vm1, %v3589_v22  ;;  %v1525_v22 = vld [vmem:[%s3911_s10 + $0x50] sm:$0xff] }
 0x366   :  { %2830 = vmatpush3.bf16.msra.mxu1 %v2827_v29  ;;  %2542 = vmatprep.mubr.msk.f32.mxu1 %vm371_vm0, %v3531_v54  ;;  %v1521_v54 = vld [vmem:[%s3911_s10 + $0x30] sm:$0xff]  ;;  %v2855_v57 = vpack.c.bf16 %v1526_v28, %v1525_v22 }
 0x367   :  { %2832 = vmatprep.subr.bf16.mxu1 %v2831_v34 }
 0x36a   :  { %2834 = vmatpush3.bf16.msra.mxu1 %v2831_v34 }
 0x36b   :  { %2860 = vmatprep.subr.bf16.mxu1 %v3781_v61 }
 0x36d   :  { %2543 = vmatmul.mubr.msk.f32.vlgmr.msra.gmra.mrb[18].mxu1 %vm371_vm0, %v3542_v9  ;;  %v1522_v9 = vld [vmem:[%s3911_s10 + $0x38] sm:$0xff] }
 0x36e   :  { %v2847_v15 = vpack.c.bf16 %v1522_v9, %v1521_v54  ;;  %2862 = vmatpush3.bf16.msra.mxu1 %v3781_v61 }
 0x36f   :  { %2864 = vmatprep.subr.bf16.mxu1 %v3786_v63 }
 0x370   :  { %2848 = vmatprep.subr.bf16.mxu0 %v2847_v15 }
 0x371   :  { %2850 = vmatpush3.bf16.msra.mxu0 %v2847_v15 }
 0x372   :  { %2852 = vmatprep.subr.bf16.mxu0 %v2851_v23  ;;  %2866 = vmatpush3.bf16.msra.mxu1 %v3786_v63 }
 0x373   :  { %2868 = vmatprep.subr.bf16.mxu1 %v2867_v2 }
 0x375   :  { %2854 = vmatpush3.bf16.msra.mxu0 %v2851_v23 }
 0x376   :  { %2856 = vmatprep.subr.bf16.mxu0 %v2855_v57  ;;  %2870 = vmatpush3.bf16.msra.mxu1 %v2867_v2 }
 0x377   :  { %2872 = vmatprep.subr.bf16.mxu1 %v2871_v7 }
 0x379   :  { %2858 = vmatpush3.bf16.msra.mxu0 %v2855_v57 }
 0x37a   :  { %2884 = vmatprep.subr.bf16.mxu0 %v3710_v3  ;;  %2874 = vmatpush3.bf16.msra.mxu1 %v2871_v7 }
 0x37b   :  { %2876 = vmatprep.subr.bf16.mxu1 %v2875_v13 }
 0x37e   :  { %2878 = vmatpush3.bf16.msra.mxu1 %v2875_v13 }
 0x430   :  { %v2504_v17 = vpop.f32.mrb[14].mxu1 }
 0x431   :  { %1512 = vst.msk [vmem:[#allocation15 + $0x8] sm:$0xff] %vm1508_vm15, %v2504_v17  ;;  %v1241_v18 = vpop.f32.mrb[15].mxu1 }
 0x432   :  { %1511 = vst.msk [vmem:[#allocation15] sm:$0xff] %vm1508_vm15, %v1241_v18 }
 0x434   :  { %v2507_v20 = vpop.f32.mrb[16].mxu1 }
 0x435   :  { %1514 = vst.msk [vmem:[#allocation15 + $0x18] sm:$0xff] %vm1508_vm15, %v2507_v20  ;;  %v1251_v24 = vpop.f32.mrb[17].mxu1 }
 0x436   :  { %1513 = vst.msk [vmem:[#allocation15 + $0x10] sm:$0xff] %vm1508_vm15, %v1251_v24 }
 0x440   :  { %v2544_v25 = vpop.f32.mrb[18].mxu1 }
 0x441   :  { %1510 = vst.msk [vmem:[#allocation14 + $0x8] sm:$0xff] %vm1508_vm15, %v2544_v25  ;;  %v1499_v27 = vpop.f32.mrb[19].mxu1 }
 0x442   :  { %1509 = vst.msk [vmem:[#allocation14] sm:$0xff] %vm1508_vm15, %v1499_v27  ;;  %2569 = vmatprep.mubr.msk.f32.mxu0 %vm1508_vm15, %v1499_v27 }
 0x443   :  { %2570 = vmatmul.mubr.msk.f32.vlgmr.msra.gmra.mrb[16].mxu0 %vm1508_vm15, %v2544_v25 }
 0x444   :  { %2886 = vmatpush3.bf16.msra.mxu0 %v3710_v3  ;;  %2623 = vmatprep.mubr.msk.f32.mxu0 %vm1508_vm15, %v1241_v18  ;;  %v1627_v3 = vld [vmem:[%s3913_s12 + $0x50] sm:$0xff] }
 0x445   :  { %2888 = vmatprep.subr.bf16.mxu0 %v3715_v5 }
 0x448   :  { %2890 = vmatpush3.bf16.msra.mxu0 %v3715_v5  ;;  %v1628_v5 = vld [vmem:[%s3913_s12 + $0x58] sm:$0xff]  ;;  %s1988_s12 = sshll.u32 %s3194_s11, 4  ;;  %s1989_s12 = int_to_ptr.vmem [resolvable:$true] %s1988_s12 }
 0x449   :  { %2892 = vmatprep.subr.bf16.mxu0 %v3749_v14  ;;  %v2879_v29 = vpack.c.bf16 %v1628_v5, %v1627_v3  ;;  %s3105_s0 = scalar_lea.vmem %s1989_s12, 512  ;;  %p3110_p1 = scmp.lt.s32.totalorder %s1989_s12, %s1989_s12 }
 0x44a   :  { %p3106_p0 = scmp.ne.s32.totalorder %s1989_s12, %s3105_s0  ;;  %p3111_p2 = scmp.lt.s32.totalorder %s3105_s0, %s3105_s0 }
 0x44b   :  { %2880 = vmatprep.subr.bf16.mxu1 %v2879_v29 }
 0x44c   :  { %2894 = vmatpush3.bf16.msra.mxu0 %v3749_v14  ;;  %2882 = vmatpush3.bf16.msra.mxu1 %v2879_v29  ;;  %p3112_p3 = por %p3111_p2, %p3110_p1 }
 0x44d   :  { %2896 = vmatprep.subr.bf16.mxu0 %v2847_v15  ;;  %2908 = vmatprep.subr.bf16.mxu1 %v3781_v61 }
 0x44e   :  { %p3113_p4 = pnand %p3112_p3, %p3106_p0 }
 0x450   :  { %2898 = vmatpush3.bf16.msra.mxu0 %v2847_v15 }
 0x451   :  { %2900 = vmatprep.subr.bf16.mxu0 %v2851_v23 }
 0x454   :  { %2902 = vmatpush3.bf16.msra.mxu0 %v2851_v23 }
 0x455   :  { %2904 = vmatprep.subr.bf16.mxu0 %v2855_v57 }
 0x458   :  { %2906 = vmatpush3.bf16.msra.mxu0 %v2855_v57 }
 0x45b   :  { %2624 = vmatmul.mubr.msk.f32.vlgmr.msra.gmra.mrb[18].mxu0 %vm1508_vm15, %v2504_v17 }
 0x45c   :  { %2626 = vmatprep.mubr.msk.f32.mxu0 %vm1508_vm15, %v1251_v24 }
 0x45f   :  { %2627 = vmatmul.mubr.msk.f32.gmra.mrb[20].mxu0 %vm1508_vm15, %v2507_v20 }
 0x516   :  { %v2571_v31 = vpop.f32.mrb[16].mxu0 }
 0x517   :  { %v1612_v32 = vadd.f32 %v2571_v31, %v2102_v30  ;;  %v1606_v33 = vpop.f32.mrb[17].mxu0 }
 0x518   :  { %v1607_v34 = vadd.f32 %v2102_v30, %v1606_v33 }
 0x519   :  { %v1616_v36 = vmax.f32 %v1612_v32, 0.0 }
 0x51a   :  { %v1615_v35 = vmax.f32 %v1607_v34, 0.0 }
 0x51c   :  { %2596 = vmatprep.mubr.msk.f32.mxu1 %vm1508_vm15, %v1615_v35 }
 0x51d   :  { %2597 = vmatmul.mubr.msk.f32.vlgmr.msra.gmra.mrb[20].mxu1 %vm1508_vm15, %v1616_v36 }
 0x51e   :  { %2910 = vmatpush3.bf16.msra.mxu1 %v3781_v61 }
 0x51f   :  { %2912 = vmatprep.subr.bf16.mxu1 %v3786_v63 }
 0x522   :  { %2914 = vmatpush3.bf16.msra.mxu1 %v3786_v63 }
 0x523   :  { %2916 = vmatprep.subr.bf16.mxu1 %v2867_v2 }
 0x526   :  { %2918 = vmatpush3.bf16.msra.mxu1 %v2867_v2 }
 0x527   :  { %2920 = vmatprep.subr.bf16.mxu1 %v2871_v7 }
 0x52a   :  { %2922 = vmatpush3.bf16.msra.mxu1 %v2871_v7 }
 0x52b   :  { %2924 = vmatprep.subr.bf16.mxu1 %v2875_v13 }
 0x52e   :  { %v2625_v37 = vpop.f32.mrb[18].mxu0  ;;  %2926 = vmatpush3.bf16.msra.mxu1 %v2875_v13 }
 0x52f   :  { %v1822_v38 = vadd.f32 %v2625_v37, %v2102_v30  ;;  %v1816_v39 = vpop.f32.mrb[19].mxu0  ;;  %2928 = vmatprep.subr.bf16.mxu1 %v2879_v29 }
 0x530   :  { %v1817_v40 = vadd.f32 %v2102_v30, %v1816_v39 }
 0x531   :  { %v1836_v42 = vmax.f32 %v1822_v38, 0.0 }
 0x532   :  { %v1835_v41 = vmax.f32 %v1817_v40, 0.0  ;;  %v2628_v11 = vpop.f32.mrb[20].mxu0  ;;  %2930 = vmatpush3.bf16.msra.mxu1 %v2879_v29 }
 0x533   :  { %v1832_v43 = vadd.f32 %v2628_v11, %v2102_v30  ;;  %v1826_v44 = vpop.f32.mrb[21].mxu0 }
 0x534   :  { %v1827_v45 = vadd.f32 %v2102_v30, %v1826_v44  ;;  %2653 = vmatprep.mubr.msk.f32.mxu1 %vm1508_vm15, %v1835_v41 }
 0x535   :  { %2654 = vmatmul.mubr.msk.f32.vlgmr.msra.gmra.mrb[22].mxu1 %vm1508_vm15, %v1836_v42  ;;  %v1838_v47 = vmax.f32 %v1832_v43, 0.0 }
 0x536   :  { %v1837_v46 = vmax.f32 %v1827_v45, 0.0 }
 0x538   :  { %2656 = vmatprep.mubr.msk.f32.mxu1 %vm1508_vm15, %v1837_v46 }
 0x539   :  { %2657 = vmatmul.mubr.msk.f32.gmra.mrb[24].mxu1 %vm1508_vm15, %v1838_v47 }
 0x5f0   :  { %v2598_v49 = vpop.f32.mrb[20].mxu1 }
 0x5f1   :  { %v1708_v56 = vpop.f32.mrb[21].mxu1  ;;  %v1714_v23 = vadd.f32 %v2598_v49, %v2105_v48 }
 0x5f2   :  { %v1709_v55 = vadd.f32 %v2105_v48, %v1708_v56 }
 0x5f3   :  { %v1718_v62 = vsub.f32 %v1714_v23, %v3527_v53 }
 0x5f4   :  { %v1717_v10 = vsub.f32 %v1709_v55, %v3465_v26 }
 0x5f6   :  { %v1719_v14 = vmul.f32 %v1717_v10, %v1717_v10 }
 0x5f8   :  { %1721 = vadd.xlane.f32.xlu1 %v1719_v14 }
 0x608   :  { %v2655_v54 = vpop.f32.mrb[22].mxu1 }
 0x609   :  { %v1923_v9 = vadd.f32 %v2655_v54, %v2105_v48  ;;  %v1917_v15 = vpop.f32.mrb[23].mxu1 }
 0x60a   :  { %v1918_v16 = vadd.f32 %v2105_v48, %v1917_v15 }
 0x60b   :  { %v1937_v21 = vsub.f32 %v1923_v9, %v3513_v50  ;;  %v1720_v50 = vmul.f32 %v1718_v62, %v1718_v62 }
 0x60c   :  { %v2658_v22 = vpop.f32.mrb[24].mxu1  ;;  %v1936_v58 = vsub.f32 %v1918_v16, %v3450_v19 }
 0x60d   :  { %v1927_v28 = vpop.f32.mrb[25].mxu1  ;;  %v1941_v57 = vmul.f32 %v1937_v21, %v1937_v21  ;;  %v1933_v59 = vadd.f32 %v2658_v22, %v2105_v48 }
 0x60e   :  { %v1928_v60 = vadd.f32 %v2105_v48, %v1927_v28  ;;  %v1940_v26 = vmul.f32 %v1936_v58, %v1936_v58 }
 0x60f   :  { %1946 = vadd.xlane.f32.xlu0 %v1941_v57  ;;  %v1939_v0 = vsub.f32 %v1933_v59, %v3525_v52 }
 0x610   :  { %v1938_v61 = vsub.f32 %v1928_v60, %v3518_v51 }
 0x611   :  { %v1943_v1 = vmul.f32 %v1939_v0, %v1939_v0 }
 0x612   :  { %v1942_v63 = vmul.f32 %v1938_v61, %v1938_v61 }
 0x613   :  { %1944 = vadd.xlane.f32.xlu0 %v1940_v26 }
 0x614   :  { %1948 = vadd.xlane.f32.xlu1 %v1942_v63 }
 0x617   :  { %1723 = vadd.xlane.f32.xlu0 %v1720_v50 }
 0x618   :  { %1950 = vadd.xlane.f32.xlu1 %v1943_v1 }
 0x619   :  { %3116 = shalt.err (!%p3113_p4)
}
 0x61a   :  { %s3117_s13 = scalar_lea.hbm %s3916_s15, 512 }
 0x61b   :  { %p3118_p5 = scmp.ne.s32.totalorder %s3916_s15, %s3117_s13  ;;  %p3121_p6 = scmp.lt.u32.totalorder %s3117_s13, %s3916_s15 }
 0x61d   :  { %p3123_p7 = pnand %p3121_p6, %p3118_p5 }
 0x61f   :  { %3126 = shalt.err (!%p3123_p7)
}
 0x620   :  { %1994 = dma.vmem_to_hbm [thread:$0]  %s1989_s12, 512, %s3916_s15, [#allocation16], %s3185_s18, %s3185_s18, %s3186_s19  }
 0x621   :  { %s3127_s24 = scalar_lea.vmem %s3852_s17, 256  ;;  %p3132_p9 = scmp.lt.s32.totalorder %s3852_s17, %s3852_s17 }
 0x622   :  { %p3128_p8 = scmp.ne.s32.totalorder %s3852_s17, %s3127_s24  ;;  %p3133_p10 = scmp.lt.s32.totalorder %s3127_s24, %s3127_s24 }
 0x624   :  { %p3134_p11 = por %p3133_p10, %p3132_p9 }
 0x626   :  { %p3135_p12 = pnand %p3134_p11, %p3128_p8 }
 0x628   :  { %3138 = shalt.err (!%p3135_p12)
}
 0x629   :  { %s3139_s27 = scalar_lea.hbm %s3915_s14, 256 }
 0x62a   :  { %p3140_p13 = scmp.ne.s32.totalorder %s3915_s14, %s3139_s27  ;;  %p3143_p0 = scmp.lt.u32.totalorder %s3139_s27, %s3915_s14 }
 0x62c   :  { %p3145_p1 = pnand %p3143_p0, %p3140_p13 }
 0x62e   :  { %3148 = shalt.err (!%p3145_p1)
}
 0x62f   :  { %1982 = dma.vmem_to_hbm [thread:$0]  %s3852_s17, 256, %s3915_s14, [#allocation4], %s3185_s18, %s3185_s18, %s3186_s19   ;;  %vm1969_vm0 = vcmask 0  }
 0x630   :  { %s3196_s14 = smov [#allocation17]  }
 0x631   :  { %s2001_s18 = sshll.u32 %s3196_s14, 4  ;;  %s2002_s18 = int_to_ptr.vmem [resolvable:$true] %s2001_s18 }
 0x632   :  { %s3149_s19 = scalar_lea.vmem %s2002_s18, 16  ;;  %s3153_s29 = scalar_lea.vmem %s2002_s18, 32 }
 0x633   :  { %p3150_p2 = scmp.ne.s32.totalorder %s2002_s18, %s3149_s19  ;;  %p3154_p3 = scmp.lt.s32.totalorder %s2002_s18, %s2002_s18 }
 0x634   :  { %p3155_p4 = scmp.lt.s32.totalorder %s3153_s29, %s3149_s19 }
 0x636   :  { %p3156_p5 = por %p3155_p4, %p3154_p3 }
 0x638   :  { %p3157_p6 = pnand %p3156_p5, %p3150_p2 }
 0x685   :  { %v1722_v51 = vpop.xlane.xlu1 %1721 }
 0x686   :  { %v1726_v12 = vmul.f32 0.0078125, %v1722_v51 }
 0x69c   :  { %v1947_v19 = vpop.xlane.xlu0 %1946 }
 0x69d   :  { %v1953_v53 = vmul.f32 0.0078125, %v1947_v19 }
 0x6a0   :  { %v1945_v52 = vpop.xlane.xlu0 %1944 }
 0x6a1   :  { %v1952_v2 = vmul.f32 0.0078125, %v1945_v52  ;;  %v1949_v4 = vpop.xlane.xlu1 %1948 }
 0x6a2   :  { %v1954_v6 = vmul.f32 0.0078125, %v1949_v4 }
 0x6a3   :  { %v1956_v7 = vadd.f32 %v1953_v53, %v1952_v2 }
 0x6a4   :  { %v1724_v8 = vpop.xlane.xlu0 %1723 }
 0x6a5   :  { %v1957_v13 = vadd.f32 %v1956_v7, %v1954_v6  ;;  %v1727_v17 = vmul.f32 0.0078125, %v1724_v8  ;;  %v1951_v18 = vpop.xlane.xlu1 %1950 }
 0x6a6   :  { %v1955_v20 = vmul.f32 0.0078125, %v1951_v18 }
 0x6a7   :  { %v1728_v24 = vadd.f32 %v1727_v17, %v1726_v12 }
 0x6a8   :  { %v1958_v25 = vadd.f32 %v1957_v13, %v1955_v20 }
 0x6a9   :  { %v1729_v27 = vrot.slane %v1728_v24, 4 }
 0x6aa   :  { %v1959_v3 = vrot.slane %v1958_v25, 4 }
 0x6ab   :  { %v1730_v5 = vadd.f32 %v1729_v27, %v1728_v24 }
 0x6ac   :  { %v1960_v29 = vadd.f32 %v1959_v3, %v1958_v25 }
 0x6ad   :  { %v1731_v30 = vrot.slane %v1730_v5, 2 }
 0x6ae   :  { %v1961_v31 = vrot.slane %v1960_v29, 2 }
 0x6af   :  { %v1732_v32 = vadd.f32 %v1731_v30, %v1730_v5 }
 0x6b0   :  { %v1962_v33 = vadd.f32 %v1961_v31, %v1960_v29 }
 0x6b1   :  { %v1733_v34 = vrot.slane %v1732_v32, 1 }
 0x6b2   :  { %v1963_v35 = vrot.slane %v1962_v33, 1 }
 0x6b3   :  { %v1734_v36 = vadd.f32 %v1733_v34, %v1732_v32 }
 0x6b4   :  { %v1964_v37 = vadd.f32 %v1963_v35, %v1962_v33 }
 0x6b5   :  { %v1736_v38 = vmul.f32 0.0625, %v1734_v36 }
 0x6b6   :  { %v1966_v39 = vmul.f32 0.03125, %v1964_v37 }
 0x6b8   :  { %v1967_v40 = vadd.f32 %v1966_v39, %v1736_v38 }
 0x6ba   :  { %v1968_v41 = vmul.f32 0.5, %v1967_v40 }
 0x6bc   :  { %1970 = vst.msk [vmem:[#allocation17] sm:$0x1] %vm1969_vm0, %v1968_v41 }
 0x6bd   :  { %3160 = shalt.err (!%p3157_p6)
}
 0x6be   :  { %s3161_s11 = scalar_lea.hbm %s3917_s16, 16 }
 0x6bf   :  { %p3162_p7 = scmp.ne.s32.totalorder %s3917_s16, %s3161_s11  ;;  %p3165_p8 = scmp.lt.u32.totalorder %s3161_s11, %s3917_s16 }
 0x6c1   :  { %p3167_p9 = pnand %p3165_p8, %p3162_p7 }
 0x6c3   :  { %3170 = shalt.err (!%p3167_p9)
}
 0x6c4   :  { %2004 = dma.vmem_to_hbm [thread:$0]  %s2002_s18, 16, %s3917_s16, [#allocation16]  }
 0x6c5   :  { %3179 = dma.done.wait [#allocation4], 256  }
 0x6c6   :  { %3180 = vsyncadd [#allocation4], 4294967040 }
 0x6c7   :  { %3181 = dma.done.wait [#allocation16], 528  }
 0x6c8   :  { %3182 = vsyncadd [#allocation16], 4294966768 }
 0x6c9   :  { %2014 = vsyncpa [#allocation3], 1 }
 0x6ca   :  { %2015 = vsyncpa [#allocation6], 1 }
 0x6cb   :  { %2016 = vsyncpa [#allocation9], 1 }
 0x6cc   :  { %2017 = vsyncpa [#allocation12], 1 }
 0x6cd   :  { %2018 = vsyncpa [#allocation4], 1 }
 0x6ce   :  { %2019 = vsyncpa [#allocation16], 1 }

</bundles_post_ra>
